<compile_context>
chip_gen: v6e
topology: v6e:2x2x1
jax: 0.10.0
libtpu: 0.0.40
codegen_flags: <defaults>
</compile_context>

<pallas_src>
import functools

import numpy as np
import jax
import jax.numpy as jnp
from jax import lax
from jax.experimental import pallas as pl
from jax.experimental.pallas import tpu as pltpu


# ----------------------------------------------------------------------------
# Fused kernel: expansion -> block-diagonal attention -> conv(depth,1) -> +res -> LayerNorm
#
#   fm_ref     : [TB*D, F]        shuffled feature map rows, ordered (b, d)
#   res_ref    : [TB, F]          residual (original features)
#   wqkv_ref   : [F, H*(2C+Cv)*F] fused Wq|Wk|Wv (resident across the grid)
#   wconv_ref  : [H, TB*D, Cv*F]  conv weight expanded to per-row / per-lane pattern
#   bias_ref   : [TB*D, TB*D]     0 inside each batch's DxD block, -1e30 elsewhere
#   rowsum_ref : [TB, TB*D]       1 where col // D == row  (sums the D depth rows per batch)
#   diagsel_ref: [TB*D, D]        1 where row % D == col   (compacts block-diag attention)
#   gamma/beta : [1, F]           LayerNorm affine
#   out_ref    : [TB, F]
#   attn_ref   : [H, TB*D, D]     attention probabilities, compacted block-diagonal
# ----------------------------------------------------------------------------
def _fused_kernel(fm_ref, res_ref, wqkv_ref, wconv_ref, bias_ref, rowsum_ref,
                  diagsel_ref, gamma_ref, beta_ref, out_ref, attn_ref,
                  *, H, C, Cv, F, inv_temperature, eps, use_bf16_matmul):
    CF = C * F
    VF = Cv * F
    HCF = H * CF

    x = fm_ref[...]                       # [TB*D, F]
    w = wqkv_ref[...]                     # [F, H*(2C+Cv)*F]
    if use_bf16_matmul:
        x = x.astype(jnp.bfloat16)
        w = w.astype(jnp.bfloat16)
    # Single fused MXU pass for Q, K and V.
    qkv = jnp.dot(x, w, preferred_element_type=jnp.float32)   # [TB*D, H*(2C+Cv)*F]

    bias = bias_ref[...]                  # [TB*D, TB*D]
    diag_sel = diagsel_ref[...]           # [TB*D, D]

    wsum = None
    for h in range(H):                    # H is small and static -> unrolled
        qh = qkv[:, h * CF:(h + 1) * CF]                          # [TB*D, C*F]
        kh = qkv[:, HCF + h * CF: HCF + (h + 1) * CF]             # [TB*D, C*F]
        vh = qkv[:, 2 * HCF + h * VF: 2 * HCF + (h + 1) * VF]     # [TB*D, Cv*F]

        # Scores for every (b, d) row at once; cross-batch terms are killed by the bias.
        # dot_general contracts the last dims -> no explicit transpose of k.
        s = lax.dot_general(qh, kh, (((1,), (1,)), ((), ())),
                            preferred_element_type=jnp.float32)   # [TB*D, TB*D]
        s = s * inv_temperature + bias

        # Softmax over dim=2 of the reference (rows here); off-block entries -> exactly 0.
        m = jnp.max(s, axis=-1, keepdims=True)
        e = jnp.exp(s - m)
        l = jnp.sum(e, axis=-1, keepdims=True)
        p = e * pl.reciprocal(l, approx=True)                     # [TB*D, TB*D]

        # Compact block-diagonal attention matrix -> [TB*D, D] (diagnostic output).
        attn_ref[h] = jnp.dot(p, diag_sel, preferred_element_type=jnp.float32)

        pv, vv = p, vh
        if use_bf16_matmul:
            pv = pv.astype(jnp.bfloat16)
            vv = vv.astype(jnp.bfloat16)
        o = jnp.dot(pv, vv, preferred_element_type=jnp.float32)   # [TB*D, Cv*F]

        # (n_depth,1) conv, head-h contribution: weight each (d, cv, f) element on the VPU.
        contrib = wconv_ref[h] * o                                 # [TB*D, Cv*F]
        wsum = contrib if wsum is None else wsum + contrib

    # Sum the D depth rows of each batch block: [TB, TB*D] @ [TB*D, Cv*F] -> [TB, Cv*F]
    r = jnp.dot(rowsum_ref[...], wsum, preferred_element_type=jnp.float32)
    # Fold the Cv channel groups along lanes -> [TB, F]
    y = r[:, 0:F]
    for cv in range(1, Cv):
        y = y + r[:, cv * F:(cv + 1) * F]

    # dropout = identity (eval), residual add, LayerNorm(d_features)
    y = y + res_ref[...]
    mean = jnp.mean(y, axis=-1, keepdims=True)
    var = jnp.mean((y - mean) ** 2, axis=-1, keepdims=True)
    yhat = (y - mean) * lax.rsqrt(var + eps)
    out_ref[...] = yhat * gamma_ref[...] + beta_ref[...]


# ----------------------------------------------------------------------------
# Wrapper reproducing ShuffleSelfAttentionLayer.forward (mode='1d', features.dim()==2)
# ----------------------------------------------------------------------------
def shuffle_self_attention_layer(features, params, index, *,
                                 n_depth, d_features, n_head, n_channel, n_vchannel,
                                 block_b=8, use_bf16_matmul=False, eps=1e-5):
    """features: [B, F].  Returns (output [B, F], attn [H*B, D, D])."""
    B, _ = features.shape
    D, F, H, C, Cv = n_depth, d_features, n_head, n_channel, n_vchannel
    VF = Cv * F
    TOT = H * (2 * C + Cv) * F

    # Batch tile: keep the sublane dim a multiple of 8 unless the block is the whole batch.
    if B % block_b == 0 and block_b % 8 == 0:
        TB = block_b
    else:
        TB = B
    n_blocks = B // TB

    # ---- layout plumbing done once in the wrapper (tiny constants / free views) ----
    # feature shuffle: features[:, index].view(-1, D, F), flattened to rows ordered (b, d)
    fm2 = features[:, index].reshape(B * D, F)
    # fused Q|K|V weight so x streams through the MXU once
    wqkv = jnp.concatenate([params["wq"], params["wk"], params["wv"]], axis=1)   # [F, TOT]

    # conv weight [H*Cv, D] expanded so wconv_tiled[h, b*D+d, cv*F+f] = conv_w[h*Cv+cv, d]
    w3 = jnp.transpose(params["conv_w"].reshape(H, Cv, D), (0, 2, 1))            # (h, d, cv)
    wexp = jnp.broadcast_to(w3[:, :, :, None], (H, D, Cv, F)).reshape(H, D, VF)
    wconv_tiled = jnp.tile(wexp, (1, TB, 1))                                     # [H, TB*D, VF]

    # block-diagonal softmax bias, depth row-sum matrix, block-diagonal selector
    rows = np.arange(TB * D)
    bias_np = np.where((rows[:, None] // D) == (rows[None, :] // D),
                       0.0, -1e30).astype(np.float32)                            # [TB*D, TB*D]
    rowsum_np = ((rows[None, :] // D) == np.arange(TB)[:, None]).astype(np.float32)  # [TB, TB*D]
    diagsel_np = ((rows[:, None] % D) == np.arange(D)[None, :]).astype(np.float32)   # [TB*D, D]
    bias = jnp.asarray(bias_np)
    rowsum = jnp.asarray(rowsum_np)
    diagsel = jnp.asarray(diagsel_np)

    gamma2 = params["ln_gamma"].reshape(1, F)
    beta2 = params["ln_beta"].reshape(1, F)

    kern = functools.partial(
        _fused_kernel, H=H, C=C, Cv=Cv, F=F,
        inv_temperature=float(1.0 / np.power(D, 0.5)), eps=float(eps),
        use_bf16_matmul=use_bf16_matmul)

    const2 = lambda shape: pl.BlockSpec(shape, lambda i: (0, 0))

    out, attn = pl.pallas_call(
        kern,
        grid=(n_blocks,),
        in_specs=[
            pl.BlockSpec((TB * D, F), lambda i: (i, 0)),          # shuffled feature map
            pl.BlockSpec((TB, F), lambda i: (i, 0)),              # residual
            const2((F, TOT)),                                     # fused Wq|Wk|Wv (resident)
            pl.BlockSpec((H, TB * D, VF), lambda i: (0, 0, 0)),   # expanded conv weights
            const2((TB * D, TB * D)),                             # block-diag softmax bias
            const2((TB, TB * D)),                                 # depth row-sum matrix
            const2((TB * D, D)),                                  # block-diag selector
            const2((1, F)),                                       # LN gamma
            const2((1, F)),                                       # LN beta
        ],
        out_specs=(
            pl.BlockSpec((TB, F), lambda i: (i, 0)),              # lane-dense [TB, F] output
            pl.BlockSpec((H, TB * D, D), lambda i: (0, i, 0)),    # compacted attention
        ),
        out_shape=(
            jax.ShapeDtypeStruct((B, F), jnp.float32),
            jax.ShapeDtypeStruct((H, B * D, D), jnp.float32),
        ),
        compiler_params=pltpu.CompilerParams(
            dimension_semantics=("parallel",)),
    )(fm2, features, wqkv, wconv_tiled, bias, rowsum, diagsel, gamma2, beta2)

    # [H, B*D, D] -> [H*B, D, D]  (free views; index = h*B + b, matching the reference)
    attn = attn.reshape(H, B, D, D).reshape(H * B, D, D)
    return out, attn


# ----------------------------------------------------------------------------
# Parameter / index construction (matches the reference module's init choices)
# ----------------------------------------------------------------------------
def feature_shuffle_index(d_features, depth, seed=0):
    rng = np.random.RandomState(seed)
    return np.concatenate([rng.permutation(d_features) for _ in range(depth)])


def xavier_normal(key, shape, fan_in, fan_out):
    std = float(np.sqrt(2.0 / (fan_in + fan_out)))
    return std * jax.random.normal(key, shape, dtype=jnp.float32)


def make_params(key, n_depth, d_features, n_head, n_channel, n_vchannel):
    kq, kk, kv, kc = jax.random.split(key, 4)
    F = d_features
    cq = n_head * n_channel * F
    cv = n_head * n_vchannel * F
    return {
        # expansion layers (linear on the feature axis), xavier_normal_ init
        "wq": xavier_normal(kq, (F, cq), F, cq),
        "wk": xavier_normal(kk, (F, cq), F, cq),
        "wv": xavier_normal(kv, (F, cv), F, cv),
        # nn.Conv2d(n_head*n_vchannel, 1, kernel_size=(n_depth, 1), bias=False), xavier init
        "conv_w": xavier_normal(
            kc, (n_head * n_vchannel, n_depth),
            n_head * n_vchannel * n_depth, n_depth),
        # nn.LayerNorm(d_features) defaults
        "ln_gamma": jnp.ones((F,), jnp.float32),
        "ln_beta": jnp.zeros((F,), jnp.float32),
    }


if __name__ == "__main__":
    # Small, forward-consistent shapes (F=128 keeps all outputs lane-dense; grid has 2 steps
    # so both v7x TensorCores get work).
    batch, d_features, n_depth = 16, 128, 4
    n_head, n_channel, n_vchannel = 2, 2, 2

    key = jax.random.PRNGKey(0)
    kfeat, kpar = jax.random.split(key)
    features = jax.random.normal(kfeat, (batch, d_features), dtype=jnp.float32)

    params = make_params(kpar, n_depth, d_features, n_head, n_channel, n_vchannel)
    index = jnp.asarray(feature_shuffle_index(d_features, n_depth, seed=0), dtype=jnp.int32)

    fwd = jax.jit(functools.partial(
        shuffle_self_attention_layer,
        n_depth=n_depth, d_features=d_features, n_head=n_head,
        n_channel=n_channel, n_vchannel=n_vchannel,
        block_b=8, use_bf16_matmul=False))

    output, attn = fwd(features, params, index)
    jax.block_until_ready((output, attn))

    assert output.shape == (batch, d_features)
    assert attn.shape == (n_head * batch, n_depth, n_depth)
    assert bool(jnp.all(jnp.isfinite(output)))
    assert bool(jnp.all(jnp.isfinite(attn)))
    print("KERNEL_OK")
</pallas_src>

<mosaic_0001>
module attributes {stable_mosaic.version = 11 : i64} {
  func.func @_fused_kernel(%arg0: i32, %arg1: memref<32x128xf32, #tpu.memory_space<vmem>>, %arg2: memref<8x128xf32, #tpu.memory_space<vmem>>, %arg3: memref<128x1536xf32, #tpu.memory_space<vmem>>, %arg4: memref<2x32x256xf32, #tpu.memory_space<vmem>>, %arg5: memref<32x32xf32, #tpu.memory_space<vmem>>, %arg6: memref<8x32xf32, #tpu.memory_space<vmem>>, %arg7: memref<32x4xf32, #tpu.memory_space<vmem>>, %arg8: memref<1x128xf32, #tpu.memory_space<vmem>>, %arg9: memref<1x128xf32, #tpu.memory_space<vmem>>, %arg10: memref<8x128xf32, #tpu.memory_space<vmem>>, %arg11: memref<2x32x4xf32, #tpu.memory_space<vmem>>) attributes {dimension_semantics = [#tpu.dimension_semantics<parallel>], iteration_bounds = array<i64: 2>, scalar_prefetch = 0 : i64, scratch_operands = 0 : i64, tpu.core_type = #tpu.core_type<tc>, window_params = [{transform_indices = @transform_0, window_bounds = array<i64: 32, 128>}, {transform_indices = @transform_1, window_bounds = array<i64: 8, 128>}, {pipeline_mode = #tpu.pipeline_mode<synchronous>, transform_indices = @transform_2, window_bounds = array<i64: 128, 1536>}, {pipeline_mode = #tpu.pipeline_mode<synchronous>, transform_indices = @transform_3, window_bounds = array<i64: 2, 32, 256>}, {pipeline_mode = #tpu.pipeline_mode<synchronous>, transform_indices = @transform_4, window_bounds = array<i64: 32, 32>}, {pipeline_mode = #tpu.pipeline_mode<synchronous>, transform_indices = @transform_5, window_bounds = array<i64: 8, 32>}, {pipeline_mode = #tpu.pipeline_mode<synchronous>, transform_indices = @transform_6, window_bounds = array<i64: 32, 4>}, {pipeline_mode = #tpu.pipeline_mode<synchronous>, transform_indices = @transform_7, window_bounds = array<i64: 1, 128>}, {pipeline_mode = #tpu.pipeline_mode<synchronous>, transform_indices = @transform_8, window_bounds = array<i64: 1, 128>}, {transform_indices = @transform_9, window_bounds = array<i64: 8, 128>}, {transform_indices = @transform_10, window_bounds = array<i64: 2, 32, 4>}]} {
    %c0 = arith.constant 0 : index
    %c0_0 = arith.constant 0 : index
    %0 = vector.load %arg1[%c0, %c0_0] : memref<32x128xf32, #tpu.memory_space<vmem>>, vector<32x128xf32>
    %c0_1 = arith.constant 0 : index
    %c0_2 = arith.constant 0 : index
    %1 = vector.load %arg3[%c0_1, %c0_2] : memref<128x1536xf32, #tpu.memory_space<vmem>>, vector<128x1536xf32>
    %cst = arith.constant dense<0.000000e+00> : vector<32x1536xf32>
    %2 = tpu.matmul %0, %1, %cst {dimension_numbers = #tpu.dot_dimension_numbers<[1], [0], [0], [1], [0, 0, 1, 1], [], []>} : vector<32x128xf32>, vector<128x1536xf32>, vector<32x1536xf32> -> vector<32x1536xf32>
    %c0_3 = arith.constant 0 : index
    %c0_4 = arith.constant 0 : index
    %3 = vector.load %arg5[%c0_3, %c0_4] : memref<32x32xf32, #tpu.memory_space<vmem>>, vector<32x32xf32>
    %c0_5 = arith.constant 0 : index
    %c0_6 = arith.constant 0 : index
    %4 = vector.load %arg7[%c0_5, %c0_6] : memref<32x4xf32, #tpu.memory_space<vmem>>, vector<32x4xf32>
    %5 = vector.extract_strided_slice %2 {offsets = [0, 0], sizes = [32, 256], strides = [1, 1]} : vector<32x1536xf32> to vector<32x256xf32>
    %6 = vector.extract_strided_slice %2 {offsets = [0, 512], sizes = [32, 256], strides = [1, 1]} : vector<32x1536xf32> to vector<32x256xf32>
    %7 = vector.extract_strided_slice %2 {offsets = [0, 1024], sizes = [32, 256], strides = [1, 1]} : vector<32x1536xf32> to vector<32x256xf32>
    %cst_7 = arith.constant dense<0.000000e+00> : vector<32x32xf32>
    %8 = tpu.matmul %5, %6, %cst_7 {dimension_numbers = #tpu.dot_dimension_numbers<[1], [1], [0], [0], [0, 0, 1, 0], [], []>} : vector<32x256xf32>, vector<32x256xf32>, vector<32x32xf32> -> vector<32x32xf32>
    %cst_8 = arith.constant 5.000000e-01 : f32
    %9 = vector.broadcast %cst_8 : f32 to vector<32x32xf32>
    %10 = arith.mulf %8, %9 : vector<32x32xf32>
    %11 = arith.addf %10, %3 : vector<32x32xf32>
    %cst_9 = arith.constant dense<0xFF800000> : vector<32xf32>
    %12 = vector.multi_reduction <maximumf>, %11, %cst_9 [1] : vector<32x32xf32> to vector<32xf32>
    %13 = vector.shape_cast %12 : vector<32xf32> to vector<32x1xf32>
    %14 = vector.broadcast %13 : vector<32x1xf32> to vector<32x32xf32>
    %15 = arith.subf %11, %14 : vector<32x32xf32>
    %16 = math.exp %15 : vector<32x32xf32>
    %cst_10 = arith.constant dense<0.000000e+00> : vector<32xf32>
    %17 = vector.multi_reduction <add>, %16, %cst_10 [1] : vector<32x32xf32> to vector<32xf32>
    %18 = vector.shape_cast %17 : vector<32xf32> to vector<32x1xf32>
    %19 = tpu.reciprocal %18 {approx = true} : vector<32x1xf32> -> vector<32x1xf32>
    %20 = vector.broadcast %19 : vector<32x1xf32> to vector<32x32xf32>
    %21 = arith.mulf %16, %20 : vector<32x32xf32>
    %cst_11 = arith.constant dense<0.000000e+00> : vector<32x4xf32>
    %22 = tpu.matmul %21, %4, %cst_11 {dimension_numbers = #tpu.dot_dimension_numbers<[1], [0], [0], [1], [0, 0, 1, 1], [], []>} : vector<32x32xf32>, vector<32x4xf32>, vector<32x4xf32> -> vector<32x4xf32>
    %c0_12 = arith.constant 0 : index
    %c0_13 = arith.constant 0 : index
    %c0_14 = arith.constant 0 : index
    %23 = vector.load %arg11[%c0_12, %c0_13, %c0_14] : memref<2x32x4xf32, #tpu.memory_space<vmem>>, vector<1x32x4xf32>
    %24 = vector.shape_cast %23 : vector<1x32x4xf32> to vector<32x4xf32>
    %25 = vector.shape_cast %22 : vector<32x4xf32> to vector<1x32x4xf32>
    tpu.vector_store %arg11[%c0_12, %c0_13, %c0_14], %25 {strides = array<i32>} : memref<2x32x4xf32, #tpu.memory_space<vmem>>, vector<1x32x4xf32>,
    %cst_15 = arith.constant dense<0.000000e+00> : vector<32x256xf32>
    %26 = tpu.matmul %21, %7, %cst_15 {dimension_numbers = #tpu.dot_dimension_numbers<[1], [0], [0], [1], [0, 0, 1, 1], [], []>} : vector<32x32xf32>, vector<32x256xf32>, vector<32x256xf32> -> vector<32x256xf32>
    %c0_16 = arith.constant 0 : index
    %c0_17 = arith.constant 0 : index
    %c0_18 = arith.constant 0 : index
    %27 = vector.load %arg4[%c0_16, %c0_17, %c0_18] : memref<2x32x256xf32, #tpu.memory_space<vmem>>, vector<1x32x256xf32>
    %28 = vector.shape_cast %27 : vector<1x32x256xf32> to vector<32x256xf32>
    %29 = arith.mulf %28, %26 : vector<32x256xf32>
    %30 = vector.extract_strided_slice %2 {offsets = [0, 256], sizes = [32, 256], strides = [1, 1]} : vector<32x1536xf32> to vector<32x256xf32>
    %31 = vector.extract_strided_slice %2 {offsets = [0, 768], sizes = [32, 256], strides = [1, 1]} : vector<32x1536xf32> to vector<32x256xf32>
    %32 = vector.extract_strided_slice %2 {offsets = [0, 1280], sizes = [32, 256], strides = [1, 1]} : vector<32x1536xf32> to vector<32x256xf32>
    %cst_19 = arith.constant dense<0.000000e+00> : vector<32x32xf32>
    %33 = tpu.matmul %30, %31, %cst_19 {dimension_numbers = #tpu.dot_dimension_numbers<[1], [1], [0], [0], [0, 0, 1, 0], [], []>} : vector<32x256xf32>, vector<32x256xf32>, vector<32x32xf32> -> vector<32x32xf32>
    %cst_20 = arith.constant 5.000000e-01 : f32
    %34 = vector.broadcast %cst_20 : f32 to vector<32x32xf32>
    %35 = arith.mulf %33, %34 : vector<32x32xf32>
    %36 = arith.addf %35, %3 : vector<32x32xf32>
    %cst_21 = arith.constant dense<0xFF800000> : vector<32xf32>
    %37 = vector.multi_reduction <maximumf>, %36, %cst_21 [1] : vector<32x32xf32> to vector<32xf32>
    %38 = vector.shape_cast %37 : vector<32xf32> to vector<32x1xf32>
    %39 = vector.broadcast %38 : vector<32x1xf32> to vector<32x32xf32>
    %40 = arith.subf %36, %39 : vector<32x32xf32>
    %41 = math.exp %40 : vector<32x32xf32>
    %cst_22 = arith.constant dense<0.000000e+00> : vector<32xf32>
    %42 = vector.multi_reduction <add>, %41, %cst_22 [1] : vector<32x32xf32> to vector<32xf32>
    %43 = vector.shape_cast %42 : vector<32xf32> to vector<32x1xf32>
    %44 = tpu.reciprocal %43 {approx = true} : vector<32x1xf32> -> vector<32x1xf32>
    %45 = vector.broadcast %44 : vector<32x1xf32> to vector<32x32xf32>
    %46 = arith.mulf %41, %45 : vector<32x32xf32>
    %cst_23 = arith.constant dense<0.000000e+00> : vector<32x4xf32>
    %47 = tpu.matmul %46, %4, %cst_23 {dimension_numbers = #tpu.dot_dimension_numbers<[1], [0], [0], [1], [0, 0, 1, 1], [], []>} : vector<32x32xf32>, vector<32x4xf32>, vector<32x4xf32> -> vector<32x4xf32>
    %c1 = arith.constant 1 : index
    %c0_24 = arith.constant 0 : index
    %c0_25 = arith.constant 0 : index
    %48 = vector.load %arg11[%c1, %c0_24, %c0_25] : memref<2x32x4xf32, #tpu.memory_space<vmem>>, vector<1x32x4xf32>
    %49 = vector.shape_cast %48 : vector<1x32x4xf32> to vector<32x4xf32>
    %50 = vector.shape_cast %47 : vector<32x4xf32> to vector<1x32x4xf32>
    tpu.vector_store %arg11[%c1, %c0_24, %c0_25], %50 {strides = array<i32>} : memref<2x32x4xf32, #tpu.memory_space<vmem>>, vector<1x32x4xf32>,
    %cst_26 = arith.constant dense<0.000000e+00> : vector<32x256xf32>
    %51 = tpu.matmul %46, %32, %cst_26 {dimension_numbers = #tpu.dot_dimension_numbers<[1], [0], [0], [1], [0, 0, 1, 1], [], []>} : vector<32x32xf32>, vector<32x256xf32>, vector<32x256xf32> -> vector<32x256xf32>
    %c1_27 = arith.constant 1 : index
    %c0_28 = arith.constant 0 : index
    %c0_29 = arith.constant 0 : index
    %52 = vector.load %arg4[%c1_27, %c0_28, %c0_29] : memref<2x32x256xf32, #tpu.memory_space<vmem>>, vector<1x32x256xf32>
    %53 = vector.shape_cast %52 : vector<1x32x256xf32> to vector<32x256xf32>
    %54 = arith.mulf %53, %51 : vector<32x256xf32>
    %55 = arith.addf %29, %54 : vector<32x256xf32>
    %c0_30 = arith.constant 0 : index
    %c0_31 = arith.constant 0 : index
    %56 = vector.load %arg6[%c0_30, %c0_31] : memref<8x32xf32, #tpu.memory_space<vmem>>, vector<8x32xf32>
    %cst_32 = arith.constant dense<0.000000e+00> : vector<8x256xf32>
    %57 = tpu.matmul %56, %55, %cst_32 {dimension_numbers = #tpu.dot_dimension_numbers<[1], [0], [0], [1], [0, 0, 1, 1], [], []>} : vector<8x32xf32>, vector<32x256xf32>, vector<8x256xf32> -> vector<8x256xf32>
    %58 = vector.extract_strided_slice %57 {offsets = [0, 0], sizes = [8, 128], strides = [1, 1]} : vector<8x256xf32> to vector<8x128xf32>
    %59 = vector.extract_strided_slice %57 {offsets = [0, 128], sizes = [8, 128], strides = [1, 1]} : vector<8x256xf32> to vector<8x128xf32>
    %60 = arith.addf %58, %59 : vector<8x128xf32>
    %c0_33 = arith.constant 0 : index
    %c0_34 = arith.constant 0 : index
    %61 = vector.load %arg2[%c0_33, %c0_34] : memref<8x128xf32, #tpu.memory_space<vmem>>, vector<8x128xf32>
    %62 = arith.addf %60, %61 : vector<8x128xf32>
    %cst_35 = arith.constant dense<0.000000e+00> : vector<8xf32>
    %63 = vector.multi_reduction <add>, %62, %cst_35 [1] : vector<8x128xf32> to vector<8xf32>
    %64 = vector.shape_cast %63 : vector<8xf32> to vector<8x1xf32>
    %cst_36 = arith.constant 1.280000e+02 : f32
    %65 = vector.broadcast %cst_36 : f32 to vector<8x1xf32>
    %66 = arith.divf %64, %65 : vector<8x1xf32>
    %67 = vector.broadcast %66 : vector<8x1xf32> to vector<8x128xf32>
    %68 = arith.subf %62, %67 : vector<8x128xf32>
    %69 = arith.mulf %68, %68 : vector<8x128xf32>
    %cst_37 = arith.constant dense<0.000000e+00> : vector<8xf32>
    %70 = vector.multi_reduction <add>, %69, %cst_37 [1] : vector<8x128xf32> to vector<8xf32>
    %71 = vector.shape_cast %70 : vector<8xf32> to vector<8x1xf32>
    %cst_38 = arith.constant 1.280000e+02 : f32
    %72 = vector.broadcast %cst_38 : f32 to vector<8x1xf32>
    %73 = arith.divf %71, %72 : vector<8x1xf32>
    %74 = vector.broadcast %66 : vector<8x1xf32> to vector<8x128xf32>
    %75 = arith.subf %62, %74 : vector<8x128xf32>
    %cst_39 = arith.constant 9.99999974E-6 : f32
    %76 = vector.broadcast %cst_39 : f32 to vector<8x1xf32>
    %77 = arith.addf %73, %76 : vector<8x1xf32>
    %78 = math.rsqrt %77 : vector<8x1xf32>
    %79 = vector.broadcast %78 : vector<8x1xf32> to vector<8x128xf32>
    %80 = arith.mulf %75, %79 : vector<8x128xf32>
    %c0_40 = arith.constant 0 : index
    %c0_41 = arith.constant 0 : index
    %81 = vector.load %arg8[%c0_40, %c0_41] : memref<1x128xf32, #tpu.memory_space<vmem>>, vector<1x128xf32>
    %82 = vector.broadcast %81 : vector<1x128xf32> to vector<8x128xf32>
    %83 = arith.mulf %80, %82 : vector<8x128xf32>
    %c0_42 = arith.constant 0 : index
    %c0_43 = arith.constant 0 : index
    %84 = vector.load %arg9[%c0_42, %c0_43] : memref<1x128xf32, #tpu.memory_space<vmem>>, vector<1x128xf32>
    %85 = vector.broadcast %84 : vector<1x128xf32> to vector<8x128xf32>
    %86 = arith.addf %83, %85 : vector<8x128xf32>
    %c0_44 = arith.constant 0 : index
    %c0_45 = arith.constant 0 : index
    %87 = vector.load %arg10[%c0_44, %c0_45] : memref<8x128xf32, #tpu.memory_space<vmem>>, vector<8x128xf32>
    tpu.vector_store %arg10[%c0_44, %c0_45], %86 {strides = array<i32>} : memref<8x128xf32, #tpu.memory_space<vmem>>, vector<8x128xf32>,
    return
  }
  func.func @transform_0(%arg0: i32) -> (i32, i32) {
    %c0_i32 = arith.constant 0 : i32
    %c0_i32_0 = arith.constant 0 : i32
    return %arg0, %c0_i32 : i32, i32
  }
  func.func @transform_1(%arg0: i32) -> (i32, i32) {
    %c0_i32 = arith.constant 0 : i32
    %c0_i32_0 = arith.constant 0 : i32
    return %arg0, %c0_i32 : i32, i32
  }
  func.func @transform_2(%arg0: i32) -> (i32, i32) {
    %c0_i32 = arith.constant 0 : i32
    %c0_i32_0 = arith.constant 0 : i32
    %c0_i32_1 = arith.constant 0 : i32
    return %c0_i32, %c0_i32_0 : i32, i32
  }
  func.func @transform_3(%arg0: i32) -> (i32, i32, i32) {
    %c0_i32 = arith.constant 0 : i32
    %c0_i32_0 = arith.constant 0 : i32
    %c0_i32_1 = arith.constant 0 : i32
    %c0_i32_2 = arith.constant 0 : i32
    return %c0_i32, %c0_i32_0, %c0_i32_1 : i32, i32, i32
  }
  func.func @transform_4(%arg0: i32) -> (i32, i32) {
    %c0_i32 = arith.constant 0 : i32
    %c0_i32_0 = arith.constant 0 : i32
    %c0_i32_1 = arith.constant 0 : i32
    return %c0_i32, %c0_i32_0 : i32, i32
  }
  func.func @transform_5(%arg0: i32) -> (i32, i32) {
    %c0_i32 = arith.constant 0 : i32
    %c0_i32_0 = arith.constant 0 : i32
    %c0_i32_1 = arith.constant 0 : i32
    return %c0_i32, %c0_i32_0 : i32, i32
  }
  func.func @transform_6(%arg0: i32) -> (i32, i32) {
    %c0_i32 = arith.constant 0 : i32
    %c0_i32_0 = arith.constant 0 : i32
    %c0_i32_1 = arith.constant 0 : i32
    return %c0_i32, %c0_i32_0 : i32, i32
  }
  func.func @transform_7(%arg0: i32) -> (i32, i32) {
    %c0_i32 = arith.constant 0 : i32
    %c0_i32_0 = arith.constant 0 : i32
    %c0_i32_1 = arith.constant 0 : i32
    return %c0_i32, %c0_i32_0 : i32, i32
  }
  func.func @transform_8(%arg0: i32) -> (i32, i32) {
    %c0_i32 = arith.constant 0 : i32
    %c0_i32_0 = arith.constant 0 : i32
    %c0_i32_1 = arith.constant 0 : i32
    return %c0_i32, %c0_i32_0 : i32, i32
  }
  func.func @transform_9(%arg0: i32) -> (i32, i32) {
    %c0_i32 = arith.constant 0 : i32
    %c0_i32_0 = arith.constant 0 : i32
    return %arg0, %c0_i32 : i32, i32
  }
  func.func @transform_10(%arg0: i32) -> (i32, i32, i32) {
    %c0_i32 = arith.constant 0 : i32
    %c0_i32_0 = arith.constant 0 : i32
    %c0_i32_1 = arith.constant 0 : i32
    return %c0_i32, %arg0, %c0_i32_0 : i32, i32, i32
  }
}

</mosaic_0001>

<bundles_post_ra>
// kernel: tile.7
= control target key start
LH: loop header
LB: loop body
LE: loop exit
PB: predicated region body
PF: predicated region fallthrough
CT: control target
= control target key end

     0   :  { %s581_s0 = inlined_call_operand.vmem [shape: f32[2,8,4,256], index: 0, kind: input, shape index: {}]   ;;  %s582_s1 = inlined_call_operand.vmem [shape: f32[2,32,256], index: 1, kind: output, shape index: {}]  }
   0x1   :  { %v317_v0 = vld [vmem:[%s581_s0 + $0x7c] sm:$0xf]  ;;  %v318_v1 = vld [vmem:[%s581_s0 + $0x78] sm:$0xf]  ;;  %v319_v2 = vld [vmem:[%s581_s0 + $0x74] sm:$0xf] }
   0x2   :  { %9 = vst [vmem:[#allocation0 + $0x48] sm:$0xf] %v317_v0  ;;  %14 = vst [vmem:[#allocation0 + $0xf8] sm:$0xf] %v318_v1  ;;  %v320_v3 = vld [vmem:[%s581_s0 + $0x70] sm:$0xf] }
   0x3   :  { %19 = vst [vmem:[#allocation0 + $0x20] sm:$0xf] %v319_v2  ;;  %v321_v4 = vld [vmem:[%s581_s0 + $0x6c] sm:$0xf]  ;;  %v322_v5 = vld [vmem:[%s581_s0 + $0x68] sm:$0xf] }
   0x4   :  { %24 = vst [vmem:[#allocation0 + $0xe0] sm:$0xf] %v320_v3  ;;  %29 = vst [vmem:[#allocation0 + $0xa8] sm:$0xf] %v321_v4  ;;  %v323_v6 = vld [vmem:[%s581_s0 + $0x64] sm:$0xf] }
   0x5   :  { %34 = vst [vmem:[#allocation0 + $0x90] sm:$0xf] %v322_v5  ;;  %v324_v7 = vld [vmem:[%s581_s0 + $0x60] sm:$0xf]  ;;  %v325_v8 = vld [vmem:[%s581_s0 + $0x5c] sm:$0xf] }
   0x6   :  { %39 = vst [vmem:[#allocation0 + $0xc8] sm:$0xf] %v323_v6  ;;  %44 = vst [vmem:[#allocation0 + $0xb0] sm:$0xf] %v324_v7  ;;  %v326_v9 = vld [vmem:[%s581_s0 + $0x58] sm:$0xf] }
   0x7   :  { %49 = vst [vmem:[#allocation0 + $0x78] sm:$0xf] %v325_v8  ;;  %v327_v10 = vld [vmem:[%s581_s0 + $0x54] sm:$0xf]  ;;  %v328_v11 = vld [vmem:[%s581_s0 + $0x50] sm:$0xf] }
   0x8   :  { %54 = vst [vmem:[#allocation0 + $0x70] sm:$0xf] %v326_v9  ;;  %59 = vst [vmem:[#allocation0 + $0x10] sm:$0xf] %v327_v10  ;;  %v329_v12 = vld [vmem:[%s581_s0 + $0x4c] sm:$0xf] }
   0x9   :  { %64 = vst [vmem:[#allocation0 + $0x40] sm:$0xf] %v328_v11  ;;  %v330_v13 = vld [vmem:[%s581_s0 + $0x48] sm:$0xf]  ;;  %v331_v14 = vld [vmem:[%s581_s0 + $0x44] sm:$0xf] }
   0xa   :  { %69 = vst [vmem:[#allocation0 + $0x98] sm:$0xf] %v329_v12  ;;  %74 = vst [vmem:[#allocation0 + $0x8] sm:$0xf] %v330_v13  ;;  %v332_v15 = vld [vmem:[%s581_s0 + $0x40] sm:$0xf] }
   0xb   :  { %79 = vst [vmem:[#allocation0 + $0xf0] sm:$0xf] %v331_v14  ;;  %v333_v16 = vld [vmem:[%s581_s0 + $0x3c] sm:$0xf]  ;;  %v334_v17 = vld [vmem:[%s581_s0 + $0x38] sm:$0xf] }
   0xc   :  { %84 = vst [vmem:[#allocation0 + $0x80] sm:$0xf] %v332_v15  ;;  %89 = vst [vmem:[#allocation0 + $0xc0] sm:$0xf] %v333_v16  ;;  %v335_v18 = vld [vmem:[%s581_s0 + $0x34] sm:$0xf] }
   0xd   :  { %94 = vst [vmem:[#allocation0 + $0xa0] sm:$0xf] %v334_v17  ;;  %v336_v19 = vld [vmem:[%s581_s0 + $0x30] sm:$0xf]  ;;  %v337_v20 = vld [vmem:[%s581_s0 + $0x2c] sm:$0xf] }
   0xe   :  { %99 = vst [vmem:[#allocation0 + $0xb8] sm:$0xf] %v335_v18  ;;  %104 = vst [vmem:[#allocation0 + $0x30] sm:$0xf] %v336_v19  ;;  %v338_v21 = vld [vmem:[%s581_s0 + $0x28] sm:$0xf] }
   0xf   :  { %109 = vst [vmem:[#allocation0 + $0x18] sm:$0xf] %v337_v20  ;;  %v339_v22 = vld [vmem:[%s581_s0 + $0x24] sm:$0xf]  ;;  %v340_v23 = vld [vmem:[%s581_s0 + $0x20] sm:$0xf] }
  0x10   :  { %114 = vst [vmem:[#allocation0 + $0x68] sm:$0xf] %v338_v21  ;;  %119 = vst [vmem:[#allocation0 + $0x88] sm:$0xf] %v339_v22  ;;  %v341_v24 = vld [vmem:[%s581_s0 + $0x1c] sm:$0xf] }
  0x11   :  { %124 = vst [vmem:[#allocation0 + $0x38] sm:$0xf] %v340_v23  ;;  %v342_v25 = vld [vmem:[%s581_s0 + $0x18] sm:$0xf]  ;;  %v343_v26 = vld [vmem:[%s581_s0 + $0x14] sm:$0xf] }
  0x12   :  { %129 = vst [vmem:[#allocation0 + $0x50] sm:$0xf] %v341_v24  ;;  %134 = vst [vmem:[#allocation0 + $0x28] sm:$0xf] %v342_v25  ;;  %v344_v27 = vld [vmem:[%s581_s0 + $0x10] sm:$0xf] }
  0x13   :  { %139 = vst [vmem:[#allocation0 + $0xe8] sm:$0xf] %v343_v26  ;;  %v345_v28 = vld [vmem:[%s581_s0 + $0xc] sm:$0xf]  ;;  %v346_v29 = vld [vmem:[%s581_s0 + $0x8] sm:$0xf] }
  0x14   :  { %144 = vst [vmem:[#allocation0 + $0xd0] sm:$0xf] %v344_v27  ;;  %149 = vst [vmem:[#allocation0 + $0x58] sm:$0xf] %v345_v28  ;;  %v347_v30 = vld [vmem:[%s581_s0 + $0x4] sm:$0xf] }
  0x15   :  { %154 = vst [vmem:[#allocation0] sm:$0xf] %v346_v29  ;;  %v159_v31 = vld [vmem:[%s581_s0] sm:$0xf]  ;;  %v252_v32 = vld [vmem:[#allocation0 + $0x78] sm:$0xf]  }
  0x16   :  { %158 = vst [vmem:[#allocation0 + $0xd8] sm:$0xf] %v347_v30  ;;  %160 = vst [vmem:[#allocation0 + $0x60] sm:$0xf] %v159_v31  ;;  %v240_v33 = vld [vmem:[#allocation0 + $0x40] sm:$0xf]  }
  0x17   :  { %v244_v34 = vld [vmem:[#allocation0 + $0x10] sm:$0xf]   ;;  %370 = vst [vmem:[%s582_s1 + $0x5c] sm:$0xf] %v252_v32   ;;  %v232_v37 = vld [vmem:[#allocation0 + $0x8] sm:$0xf]  }
  0x18   :  { %v248_v35 = vld [vmem:[#allocation0 + $0x70] sm:$0xf]   ;;  %v236_v38 = vld [vmem:[#allocation0 + $0x98] sm:$0xf]   ;;  %367 = vst [vmem:[%s582_s1 + $0x50] sm:$0xf] %v240_v33  }
  0x19   :  { %v228_v36 = vld [vmem:[#allocation0 + $0xf0] sm:$0xf]   ;;  %368 = vst [vmem:[%s582_s1 + $0x58] sm:$0xf] %v244_v34   ;;  %369 = vst [vmem:[%s582_s1 + $0x54] sm:$0xf] %v248_v35  }
  0x1a   :  { %v216_v39 = vld [vmem:[#allocation0 + $0xa0] sm:$0xf]   ;;  %364 = vst [vmem:[%s582_s1 + $0x48] sm:$0xf] %v228_v36   ;;  %365 = vst [vmem:[%s582_s1 + $0x44] sm:$0xf] %v232_v37  }
  0x1b   :  { %v220_v40 = vld [vmem:[#allocation0 + $0xc0] sm:$0xf]   ;;  %366 = vst [vmem:[%s582_s1 + $0x4c] sm:$0xf] %v236_v38   ;;  %v204_v42 = vld [vmem:[#allocation0 + $0x18] sm:$0xf]  }
  0x1c   :  { %v224_v41 = vld [vmem:[#allocation0 + $0x80] sm:$0xf]   ;;  %v208_v43 = vld [vmem:[#allocation0 + $0x30] sm:$0xf]   ;;  %v212_v44 = vld [vmem:[#allocation0 + $0xb8] sm:$0xf]  }
  0x1d   :  { %361 = vst [vmem:[%s582_s1 + $0x34] sm:$0xf] %v216_v39   ;;  %362 = vst [vmem:[%s582_s1 + $0x3c] sm:$0xf] %v220_v40   ;;  %v192_v45 = vld [vmem:[#allocation0 + $0x38] sm:$0xf]  }
  0x1e   :  { %363 = vst [vmem:[%s582_s1 + $0x40] sm:$0xf] %v224_v41   ;;  %v196_v46 = vld [vmem:[#allocation0 + $0x88] sm:$0xf]   ;;  %358 = vst [vmem:[%s582_s1 + $0x2c] sm:$0xf] %v204_v42  }
  0x1f   :  { %v200_v47 = vld [vmem:[#allocation0 + $0x68] sm:$0xf]   ;;  %359 = vst [vmem:[%s582_s1 + $0x30] sm:$0xf] %v208_v43   ;;  %360 = vst [vmem:[%s582_s1 + $0x38] sm:$0xf] %v212_v44  }
  0x20   :  { %v180_v48 = vld [vmem:[#allocation0 + $0xe8] sm:$0xf]   ;;  %v188_v50 = vld [vmem:[#allocation0 + $0x50] sm:$0xf]   ;;  %355 = vst [vmem:[%s582_s1 + $0x20] sm:$0xf] %v192_v45  }
  0x21   :  { %v184_v49 = vld [vmem:[#allocation0 + $0x28] sm:$0xf]   ;;  %356 = vst [vmem:[%s582_s1 + $0x28] sm:$0xf] %v196_v46   ;;  %357 = vst [vmem:[%s582_s1 + $0x24] sm:$0xf] %v200_v47  }
  0x22   :  { %v168_v51 = vld [vmem:[#allocation0] sm:$0xf]   ;;  %v172_v52 = vld [vmem:[#allocation0 + $0x58] sm:$0xf]   ;;  %v176_v53 = vld [vmem:[#allocation0 + $0xd0] sm:$0xf]  }
  0x23   :  { %352 = vst [vmem:[%s582_s1 + $0x18] sm:$0xf] %v180_v48   ;;  %353 = vst [vmem:[%s582_s1 + $0x14] sm:$0xf] %v184_v49   ;;  %v161_v54 = vld [vmem:[#allocation0 + $0x60] sm:$0xf]  }
  0x24   :  { %354 = vst [vmem:[%s582_s1 + $0x1c] sm:$0xf] %v188_v50   ;;  %v164_v55 = vld [vmem:[#allocation0 + $0xd8] sm:$0xf]   ;;  %349 = vst [vmem:[%s582_s1 + $0x4] sm:$0xf] %v168_v51  }
  0x25   :  { %350 = vst [vmem:[%s582_s1 + $0xc] sm:$0xf] %v172_v52   ;;  %351 = vst [vmem:[%s582_s1 + $0x10] sm:$0xf] %v176_v53   ;;  %v256_v56 = vld [vmem:[#allocation0 + $0xb0] sm:$0xf]  }
  0x26   :  { %162 = vst [vmem:[%s582_s1] sm:$0xf] %v161_v54   ;;  %348 = vst [vmem:[%s582_s1 + $0x8] sm:$0xf] %v164_v55   ;;  %v260_v57 = vld [vmem:[#allocation0 + $0xc8] sm:$0xf]  }
  0x27   :  { %371 = vst [vmem:[%s582_s1 + $0x60] sm:$0xf] %v256_v56   ;;  %v264_v58 = vld [vmem:[#allocation0 + $0x90] sm:$0xf]   ;;  %v268_v59 = vld [vmem:[#allocation0 + $0xa8] sm:$0xf]  }
  0x28   :  { %372 = vst [vmem:[%s582_s1 + $0x68] sm:$0xf] %v260_v57   ;;  %373 = vst [vmem:[%s582_s1 + $0x64] sm:$0xf] %v264_v58   ;;  %v272_v60 = vld [vmem:[#allocation0 + $0xe0] sm:$0xf]  }
  0x29   :  { %374 = vst [vmem:[%s582_s1 + $0x6c] sm:$0xf] %v268_v59   ;;  %v276_v61 = vld [vmem:[#allocation0 + $0x20] sm:$0xf]   ;;  %v280_v62 = vld [vmem:[#allocation0 + $0xf8] sm:$0xf]  }
  0x2a   :  { %375 = vst [vmem:[%s582_s1 + $0x70] sm:$0xf] %v272_v60   ;;  %376 = vst [vmem:[%s582_s1 + $0x78] sm:$0xf] %v276_v61   ;;  %v284_v63 = vld [vmem:[#allocation0 + $0x48] sm:$0xf]  }
  0x2b   :  { %377 = vst [vmem:[%s582_s1 + $0x74] sm:$0xf] %v280_v62   ;;  %378 = vst [vmem:[%s582_s1 + $0x7c] sm:$0xf] %v284_v63  }

// kernel: shuffle_self_attention_layer.1
= control target key start
LH: loop header
LB: loop body
LE: loop exit
PB: predicated region body
PF: predicated region fallthrough
CT: control target
= control target key end

     0   :  { %s3444_s0 = inlined_call_operand.vmem [shape: f32[64,128], index: 0, kind: input, shape index: {}]   ;;  %s3445_s1 = inlined_call_operand.vmem [shape: f32[16,128], index: 1, kind: input, shape index: {}]   ;;  %s3446_s2 = inlined_call_operand.vmem [shape: f32[128,1536], index: 2, kind: input, shape index: {}]   ;;  %s3447_s3 = inlined_call_operand.vmem [shape: f32[2,32,256], index: 3, kind: input, shape index: {}]   ;;  %s3448_s4 = inlined_call_operand.vmem [shape: f32[32,32], index: 4, kind: input, shape index: {}]   ;;  %s3449_s5 = inlined_call_operand.vmem [shape: f32[8,32], index: 5, kind: input, shape index: {}]   ;;  %s3450_s6 = inlined_call_operand.vmem [shape: f32[32,4], index: 6, kind: input, shape index: {}]   ;;  %s3451_s7 = inlined_call_operand.vmem [shape: f32[1,128], index: 7, kind: input, shape index: {}]   ;;  %s3452_s8 = inlined_call_operand.vmem [shape: f32[1,128], index: 8, kind: input, shape index: {}]   ;;  %s3453_s9 = inlined_call_operand.hbm [shape: f32[16,128], index: 9, kind: output, shape index: {0}]   ;;  %s3454_s10 = inlined_call_operand.vmem [shape: f32[2,64,4], index: 10, kind: output, shape index: {1}]  }
   0x1   :  { %3455 = sst [smem:[#allocation7_spill]] %s3444_s0 }
   0x2   :  { %3456 = sst [smem:[#allocation8_spill]] %s3445_s1 }
   0x3   :  { %3457 = sst [smem:[#allocation9_spill]] %s3446_s2 }
   0x4   :  { %16 = vsyncpa [#allocation3], 0 }
   0x5   :  { %18 = vsyncpa [#allocation3 + $0x1], 0  ;;  %s2405_s13 = smov 0   ;;  %s2407_s14 = smov 0  }
   0x6   :  { %s2409_s15 = smov 0   ;;  %s2411_s16 = smov 0  }
   0x7 LB: > { %s2426_s17 = sadd.s32 4294967295, %s2346_s16   ;;  %s2112_s18 = sadd.s32 4294967294, %s2346_s16   ;;  %s2346_s16 = sphi %s2411_s16, %s3468_s16   ;;  %s2342_s15 = sphi %s2409_s15, %s3467_s15   ;;  %s2338_s14 = sphi %s2407_s14, %s3466_s14   ;;  %s2334_s13 = sphi %s2405_s13, %s3465_s13  }
   0x8   : > { %s2430_s19 = sadd.s32 1, %s2346_s16   ;;  %s230_s20 = sadd.s32 1, %s2342_s15 }
   0x9   : > { %s227_s21 = ssub.s32 %s2346_s16, %s2430_s19  ;;  %p240_p0 = scmp.ne.s32.totalorder %s2342_s15, %s2338_s14 }
   0xa   : > { %p228_p1 = scmp.eq.s32.totalorder %s227_s21, 0  ;;  %p241_p2 = scmp.eq.s32.totalorder %s2426_s17, 1 }
   0xb   : > { %p246_p3 = scmp.ne.s32.totalorder %s2338_s14, %s2334_s13  ;;  %p247_p4 = scmp.eq.s32.totalorder %s2112_s18, 1 }
   0xc   : > { %s2441_s22 = scalar_select %p228_p1, %s2342_s15, %s230_s20  }
   0xd   : > { %p2443_p5 = por %p241_p2, %p240_p0  ;;  %p2447_p6 = por %p247_p4, %p246_p3 }
   0xe   : > { %3458 = sst [smem:[#allocation6_spill]] %s2441_s22  ;;  %p2115_p7 = scmp.ge.s32.totalorder %s2346_s16, 1 }
   0xf   : > { %p328_p8 = scmp.lt.s32.totalorder %s2346_s16, 3 }
  0x11   : > { %p329_p9 = pnand %p2115_p7, %p328_p8 }
  0x12   : > { %s3461_s2 = sld [smem:[#allocation9_spill]] (!%p329_p9)  ;;  %s2118_s21 = sshll.u32 (!%p329_p9), %s2426_s17, 2 }
  0x13   : > { %332 = sbr.rel (%p329_p9) target bundleno = 2097 (0x831), region = 56  ;;  %p375_p10 = scmp.lt.s32.totalorder (!%p329_p9), %s2118_s21, 7 }
  0x14   : > { %s3462_s0 = sld [smem:[#allocation7_spill]] (!%p329_p9)  ;;  %s3265_s22 = sand.u32 (!%p329_p9), 1, %s2338_s14  }
  0x15   : > { %p380_p11 = scmp.lt.s32.totalorder (!%p329_p9), %s2426_s17, 1  ;;  %s3463_s1 = sld [smem:[#allocation8_spill]] (!%p329_p9) }
  0x16   : > { %s2349_s18 = smov (!%p329_p9), [#allocation2]  }
  0x17   : > { %s2290_s20 = sshll.u32 (!%p329_p9), %s2349_s18, 4  ;;  %s2291_s20 = int_to_ptr.vmem [resolvable:$false] %s2290_s20 }
  0x18   : > { %v570_v0 = vld [vmem:[%s3461_s2 + $0x5a8] sm:$0xff]  ;;  %v569_v1 = vld [vmem:[%s3461_s2 + $0x5a0] sm:$0xff]  ;;  %v2348_v4 = vmov 0.0   ;;  %s3470_s21 = smov (!%p375_p10, %s2118_s21), 7  ;;  %vm1216_vm0 = vcmask 261120   ;;  %vm1358_vm1 = vcmask 31744  }
  0x19   : > { %v558_v2 = vld [vmem:[%s3461_s2 + $0x548] sm:$0xff]  ;;  %581 = vmatprep.subr.mxu0 %v570_v0  ;;  %v557_v3 = vld [vmem:[%s3461_s2 + $0x540] sm:$0xff]  ;;  %645 = vmatprep.mubr.f32.mxu0 %v2348_v4  ;;  %s2119_s27 = sshll.u32 %s3470_s21, 3  ;;  %s2292_s21 = scalar_lea.vmem %s2291_s20, 256 }
  0x1a   : > { %582 = vmatpush1.msra.mxu0 %v569_v1  ;;  %v546_v5 = vld [vmem:[%s3461_s2 + $0x4e8] sm:$0xff]  ;;  %734 = vmatprep.mubr.f32.mxu1 %v2348_v4  ;;  %v545_v6 = vld [vmem:[%s3461_s2 + $0x4e0] sm:$0xff]  ;;  %s2549_s25 = scalar_lea.vmem %s3462_s0, %s2119_s27  ;;  %s2117_s27 = sshll.u32 %s3265_s22, 6 }
  0x1b   : > { %583 = vmatprep.subr.mxu0 %v558_v2  ;;  %v534_v7 = vld [vmem:[%s3461_s2 + $0x488] sm:$0xff]  ;;  %v533_v8 = vld [vmem:[%s3461_s2 + $0x480] sm:$0xff]  ;;  %v2595_v44 = vld [vmem:[%s2549_s25 + $0x10] sm:$0xff]  ;;  %s3268_s12 = scalar_lea.vmem [#allocation4], %s2117_s27  ;;  %s2116_s27 = sshll.u32 %s3265_s22, 3 }
  0x1c   : > { %584 = vmatpush1.msra.mxu0 %v557_v3  ;;  %v522_v9 = vld [vmem:[%s3461_s2 + $0x428] sm:$0xff]  ;;  %v521_v10 = vld [vmem:[%s3461_s2 + $0x420] sm:$0xff]  ;;  %v2612_v49 = vld [vmem:[%s2549_s25 + $0x18] sm:$0xff]  ;;  %s381_s28 = scalar_select %p380_p11, %s2426_s17, 1 }
  0x1d   : > { %585 = vmatprep.subr.mxu0 %v546_v5  ;;  %v510_v11 = vld [vmem:[%s3461_s2 + $0x3c8] sm:$0xff]  ;;  %v509_v12 = vld [vmem:[%s3461_s2 + $0x3c0] sm:$0xff] }
  0x1e   : > { %586 = vmatpush1.msra.mxu0 %v545_v6  ;;  %v498_v13 = vld [vmem:[%s3461_s2 + $0x368] sm:$0xff]  ;;  %v497_v14 = vld [vmem:[%s3461_s2 + $0x360] sm:$0xff] }
  0x1f   : > { %587 = vmatprep.subr.mxu0 %v534_v7  ;;  %v486_v15 = vld [vmem:[%s3461_s2 + $0x308] sm:$0xff]  ;;  %v485_v16 = vld [vmem:[%s3461_s2 + $0x300] sm:$0xff] }
  0x20   : > { %588 = vmatpush1.msra.mxu0 %v533_v8  ;;  %v474_v17 = vld [vmem:[%s3461_s2 + $0x2a8] sm:$0xff]  ;;  %v473_v18 = vld [vmem:[%s3461_s2 + $0x2a0] sm:$0xff] }
  0x21   : > { %589 = vmatprep.subr.mxu0 %v522_v9  ;;  %v462_v19 = vld [vmem:[%s3461_s2 + $0x248] sm:$0xff]  ;;  %v461_v20 = vld [vmem:[%s3461_s2 + $0x240] sm:$0xff] }
  0x22   : > { %590 = vmatpush1.msra.mxu0 %v521_v10  ;;  %v450_v21 = vld [vmem:[%s3461_s2 + $0x1e8] sm:$0xff]  ;;  %v449_v22 = vld [vmem:[%s3461_s2 + $0x1e0] sm:$0xff] }
  0x23   : > { %591 = vmatprep.subr.mxu0 %v510_v11  ;;  %v438_v23 = vld [vmem:[%s3461_s2 + $0x188] sm:$0xff]  ;;  %v437_v24 = vld [vmem:[%s3461_s2 + $0x180] sm:$0xff] }
  0x24   : > { %592 = vmatpush1.msra.mxu0 %v509_v12  ;;  %v426_v25 = vld [vmem:[%s3461_s2 + $0x128] sm:$0xff]  ;;  %v425_v26 = vld [vmem:[%s3461_s2 + $0x120] sm:$0xff] }
  0x25   : > { %593 = vmatprep.subr.mxu0 %v498_v13  ;;  %v414_v27 = vld [vmem:[%s3461_s2 + $0xc8] sm:$0xff]  ;;  %v413_v28 = vld [vmem:[%s3461_s2 + $0xc0] sm:$0xff] }
  0x26   : > { %594 = vmatpush1.msra.mxu0 %v497_v14  ;;  %v402_v29 = vld [vmem:[%s3461_s2 + $0x68] sm:$0xff]  ;;  %v401_v30 = vld [vmem:[%s3461_s2 + $0x60] sm:$0xff] }
  0x27   : > { %595 = vmatprep.subr.mxu0 %v486_v15  ;;  %v390_v31 = vld [vmem:[%s3461_s2 + $0x8] sm:$0xff]  ;;  %v389_v32 = vld [vmem:[%s3461_s2] sm:$0xff] }
  0x28   : > { %596 = vmatpush1.msra.mxu0 %v485_v16  ;;  %v2558_v33 = vld [vmem:[%s2549_s25] sm:$0xff]  ;;  %v574_v34 = vld [vmem:[%s3461_s2 + $0x5c8] sm:$0xff] }
  0x29   : > { %597 = vmatprep.subr.mxu0 %v474_v17  ;;  %v573_v35 = vld [vmem:[%s3461_s2 + $0x5c0] sm:$0xff]  ;;  %v562_v36 = vld [vmem:[%s3461_s2 + $0x568] sm:$0xff] }
  0x2a   : > { %598 = vmatpush1.msra.mxu0 %v473_v18  ;;  %v561_v37 = vld [vmem:[%s3461_s2 + $0x560] sm:$0xff]  ;;  %v550_v38 = vld [vmem:[%s3461_s2 + $0x508] sm:$0xff] }
  0x2b   : > { %599 = vmatprep.subr.mxu0 %v462_v19  ;;  %v2578_v39 = vld [vmem:[%s2549_s25 + $0x8] sm:$0xff]  ;;  %v549_v40 = vld [vmem:[%s3461_s2 + $0x500] sm:$0xff]  ;;  %s2120_s25 = sshll.u32 %s381_s28, 3  ;;  %s2154_s28 = sshll.u32 %s2426_s17, 7 }
  0x2c   : > { %600 = vmatpush1.msra.mxu0 %v461_v20  ;;  %v538_v41 = vld [vmem:[%s3461_s2 + $0x4a8] sm:$0xff]  ;;  %v537_v42 = vld [vmem:[%s3461_s2 + $0x4a0] sm:$0xff]  ;;  %s383_s11 = scalar_lea.vmem %s3463_s1, %s2120_s25  ;;  %s367_s25 = scalar_lea.vmem [#allocation2], %s2116_s27 }
  0x2d   : > { %601 = vmatprep.subr.mxu0 %v450_v21  ;;  %v526_v43 = vld [vmem:[%s3461_s2 + $0x448] sm:$0xff]  ;;  %v525_v45 = vld [vmem:[%s3461_s2 + $0x440] sm:$0xff]  ;;  %s1946_s29 = sshll.u32 %s367_s25, 4  ;;  %s1944_s0 = scalar_lea.hbm %s3453_s9, %s2154_s28  ;;  %s1947_s29 = int_to_ptr.vmem [resolvable:$true] %s1946_s29 }
  0x2e   : > { %602 = vmatpush1.msra.mxu0 %v449_v22  ;;  %v514_v46 = vld [vmem:[%s3461_s2 + $0x3e8] sm:$0xff]  ;;  %v513_v47 = vld [vmem:[%s3461_s2 + $0x3e0] sm:$0xff]  ;;  %s1929_s1 = scalar_lea.sflag [#allocation3], %s3265_s22  ;;  %p2293_p1 = scmp.lt.s32.totalorder %s1947_s29, %s2291_s20 }
  0x2f   : > { %603 = vmatprep.subr.mxu0 %v438_v23  ;;  %v502_v48 = vld [vmem:[%s3461_s2 + $0x388] sm:$0xff]  ;;  %v501_v50 = vld [vmem:[%s3461_s2 + $0x380] sm:$0xff] }
  0x30   : > { %604 = vmatpush1.msra.mxu0 %v437_v24  ;;  %v490_v51 = vld [vmem:[%s3461_s2 + $0x328] sm:$0xff]  ;;  %v489_v52 = vld [vmem:[%s3461_s2 + $0x320] sm:$0xff] }
  0x31   : > { %605 = vmatprep.subr.mxu0 %v426_v25  ;;  %v478_v53 = vld [vmem:[%s3461_s2 + $0x2c8] sm:$0xff]  ;;  %v477_v54 = vld [vmem:[%s3461_s2 + $0x2c0] sm:$0xff] }
  0x32   : > { %606 = vmatpush1.msra.mxu0 %v425_v26  ;;  %v466_v55 = vld [vmem:[%s3461_s2 + $0x268] sm:$0xff]  ;;  %v465_v56 = vld [vmem:[%s3461_s2 + $0x260] sm:$0xff] }
  0x33   : > { %607 = vmatprep.subr.mxu0 %v414_v27  ;;  %v454_v57 = vld [vmem:[%s3461_s2 + $0x208] sm:$0xff]  ;;  %v453_v58 = vld [vmem:[%s3461_s2 + $0x200] sm:$0xff] }
  0x34   : > { %608 = vmatpush1.msra.mxu0 %v413_v28  ;;  %v442_v59 = vld [vmem:[%s3461_s2 + $0x1a8] sm:$0xff]  ;;  %v441_v60 = vld [vmem:[%s3461_s2 + $0x1a0] sm:$0xff] }
  0x35   : > { %609 = vmatprep.subr.mxu0 %v402_v29  ;;  %v430_v61 = vld [vmem:[%s3461_s2 + $0x148] sm:$0xff]  ;;  %v429_v62 = vld [vmem:[%s3461_s2 + $0x140] sm:$0xff] }
  0x36   : > { %610 = vmatpush1.msra.mxu0 %v401_v30  ;;  %v418_v63 = vld [vmem:[%s3461_s2 + $0xe8] sm:$0xff]  ;;  %v417_v0 = vld [vmem:[%s3461_s2 + $0xe0] sm:$0xff] }
  0x37   : > { %611 = vmatprep.subr.mxu0 %v390_v31  ;;  %v406_v1 = vld [vmem:[%s3461_s2 + $0x88] sm:$0xff]  ;;  %v405_v2 = vld [vmem:[%s3461_s2 + $0x80] sm:$0xff] }
  0x38   : > { %612 = vmatpush1.msra.mxu0 %v389_v32  ;;  %v394_v3 = vld [vmem:[%s3461_s2 + $0x28] sm:$0xff]  ;;  %v393_v5 = vld [vmem:[%s3461_s2 + $0x20] sm:$0xff] }
  0x39   : > { %646 = vmatmul.mubr.f32.vlgmr.msra.gmra.mxu0 %v2558_v33  ;;  %759 = vmatprep.subr.mxu0 %v574_v34  ;;  %v578_v6 = vld [vmem:[%s3461_s2 + $0x5e8] sm:$0xff]  ;;  %v577_v7 = vld [vmem:[%s3461_s2 + $0x5e0] sm:$0xff] }
  0x3a   : > { %760 = vmatpush1.msra.mxu0 %v573_v35  ;;  %651 = vmatprep.mubr.f32.mxu0 %v2348_v4  ;;  %v566_v8 = vld [vmem:[%s3461_s2 + $0x588] sm:$0xff]  ;;  %v565_v9 = vld [vmem:[%s3461_s2 + $0x580] sm:$0xff] }
  0x3b   : > { %761 = vmatprep.subr.mxu0 %v562_v36  ;;  %v554_v10 = vld [vmem:[%s3461_s2 + $0x528] sm:$0xff]  ;;  %v553_v11 = vld [vmem:[%s3461_s2 + $0x520] sm:$0xff] }
  0x3c   : > { %762 = vmatpush1.msra.mxu0 %v561_v37  ;;  %v542_v12 = vld [vmem:[%s3461_s2 + $0x4c8] sm:$0xff]  ;;  %v541_v13 = vld [vmem:[%s3461_s2 + $0x4c0] sm:$0xff] }
  0x3d   : > { %763 = vmatprep.subr.mxu0 %v550_v38  ;;  %652 = vmatmul.mubr.f32.gmra.mxu0 %v2578_v39  ;;  %v530_v14 = vld [vmem:[%s3461_s2 + $0x468] sm:$0xff]  ;;  %v529_v15 = vld [vmem:[%s3461_s2 + $0x460] sm:$0xff] }
  0x3e   : > { %764 = vmatpush1.msra.mxu0 %v549_v40  ;;  %657 = vmatprep.mubr.f32.mxu0 %v2348_v4  ;;  %v518_v16 = vld [vmem:[%s3461_s2 + $0x408] sm:$0xff]  ;;  %v517_v17 = vld [vmem:[%s3461_s2 + $0x400] sm:$0xff]  ;;  %v572_v40 = vld [vmem:[%s3461_s2 + $0x5b8] sm:$0xff] }
  0x3f   : > { %765 = vmatprep.subr.mxu0 %v538_v41  ;;  %v506_v18 = vld [vmem:[%s3461_s2 + $0x3a8] sm:$0xff]  ;;  %v505_v19 = vld [vmem:[%s3461_s2 + $0x3a0] sm:$0xff]  ;;  %v571_v41 = vld [vmem:[%s3461_s2 + $0x5b0] sm:$0xff]  ;;  %670 = vmatprep.subr.mxu1 %v572_v40 }
  0x40   : > { %766 = vmatpush1.msra.mxu0 %v537_v42  ;;  %v494_v20 = vld [vmem:[%s3461_s2 + $0x348] sm:$0xff]  ;;  %v493_v21 = vld [vmem:[%s3461_s2 + $0x340] sm:$0xff]  ;;  %v560_v42 = vld [vmem:[%s3461_s2 + $0x558] sm:$0xff]  ;;  %671 = vmatpush1.msra.mxu1 %v571_v41 }
  0x41   : > { %767 = vmatprep.subr.mxu0 %v526_v43  ;;  %658 = vmatmul.mubr.f32.gmra.mxu0 %v2595_v44  ;;  %v482_v22 = vld [vmem:[%s3461_s2 + $0x2e8] sm:$0xff]  ;;  %v481_v23 = vld [vmem:[%s3461_s2 + $0x2e0] sm:$0xff]  ;;  %v559_v43 = vld [vmem:[%s3461_s2 + $0x550] sm:$0xff] }
  0x42   : > { %768 = vmatpush1.msra.mxu0 %v525_v45  ;;  %663 = vmatprep.mubr.f32.mxu0 %v2348_v4  ;;  %v470_v24 = vld [vmem:[%s3461_s2 + $0x288] sm:$0xff]  ;;  %v469_v25 = vld [vmem:[%s3461_s2 + $0x280] sm:$0xff]  ;;  %v548_v45 = vld [vmem:[%s3461_s2 + $0x4f8] sm:$0xff] }
  0x43   : > { %769 = vmatprep.subr.mxu0 %v514_v46  ;;  %v458_v26 = vld [vmem:[%s3461_s2 + $0x228] sm:$0xff]  ;;  %v457_v27 = vld [vmem:[%s3461_s2 + $0x220] sm:$0xff]  ;;  %672 = vmatprep.subr.mxu1 %v560_v42  ;;  %v547_v46 = vld [vmem:[%s3461_s2 + $0x4f0] sm:$0xff] }
  0x44   : > { %770 = vmatpush1.msra.mxu0 %v513_v47  ;;  %v446_v28 = vld [vmem:[%s3461_s2 + $0x1c8] sm:$0xff]  ;;  %v445_v29 = vld [vmem:[%s3461_s2 + $0x1c0] sm:$0xff]  ;;  %673 = vmatpush1.msra.mxu1 %v559_v43  ;;  %v536_v47 = vld [vmem:[%s3461_s2 + $0x498] sm:$0xff] }
  0x45   : > { %771 = vmatprep.subr.mxu0 %v502_v48  ;;  %664 = vmatmul.mubr.f32.gmra.mxu0 %v2612_v49  ;;  %v434_v30 = vld [vmem:[%s3461_s2 + $0x168] sm:$0xff]  ;;  %v433_v31 = vld [vmem:[%s3461_s2 + $0x160] sm:$0xff]  ;;  %v535_v48 = vld [vmem:[%s3461_s2 + $0x490] sm:$0xff] }
  0x46   : > { %772 = vmatpush1.msra.mxu0 %v501_v50  ;;  %823 = vmatprep.mubr.f32.mxu0 %v2348_v4  ;;  %v422_v32 = vld [vmem:[%s3461_s2 + $0x108] sm:$0xff]  ;;  %v421_v34 = vld [vmem:[%s3461_s2 + $0x100] sm:$0xff]  ;;  %v524_v50 = vld [vmem:[%s3461_s2 + $0x438] sm:$0xff] }
  0x47   : > { %773 = vmatprep.subr.mxu0 %v490_v51  ;;  %v410_v35 = vld [vmem:[%s3461_s2 + $0xa8] sm:$0xff]  ;;  %v409_v36 = vld [vmem:[%s3461_s2 + $0xa0] sm:$0xff]  ;;  %674 = vmatprep.subr.mxu1 %v548_v45  ;;  %v523_v51 = vld [vmem:[%s3461_s2 + $0x430] sm:$0xff] }
  0x48   : > { %774 = vmatpush1.msra.mxu0 %v489_v52  ;;  %v398_v37 = vld [vmem:[%s3461_s2 + $0x48] sm:$0xff]  ;;  %v397_v38 = vld [vmem:[%s3461_s2 + $0x40] sm:$0xff]  ;;  %675 = vmatpush1.msra.mxu1 %v547_v46  ;;  %v512_v52 = vld [vmem:[%s3461_s2 + $0x3d8] sm:$0xff] }
  0x49   : > { %775 = vmatprep.subr.mxu0 %v478_v53  ;;  %676 = vmatprep.subr.mxu1 %v536_v47  ;;  %v511_v53 = vld [vmem:[%s3461_s2 + $0x3d0] sm:$0xff]  ;;  %v420_v41 = vld [vmem:[%s3461_s2 + $0xf8] sm:$0xff] }
  0x4a   : > { %776 = vmatpush1.msra.mxu0 %v477_v54  ;;  %677 = vmatpush1.msra.mxu1 %v535_v48  ;;  %v500_v54 = vld [vmem:[%s3461_s2 + $0x378] sm:$0xff]  ;;  %v431_v40 = vld [vmem:[%s3461_s2 + $0x150] sm:$0xff] }
  0x4b   : > { %777 = vmatprep.subr.mxu0 %v466_v55  ;;  %678 = vmatprep.subr.mxu1 %v524_v50  ;;  %v499_v55 = vld [vmem:[%s3461_s2 + $0x370] sm:$0xff]  ;;  %v408_v43 = vld [vmem:[%s3461_s2 + $0x98] sm:$0xff] }
  0x4c   : > { %778 = vmatpush1.msra.mxu0 %v465_v56  ;;  %679 = vmatpush1.msra.mxu1 %v523_v51  ;;  %v488_v56 = vld [vmem:[%s3461_s2 + $0x318] sm:$0xff]  ;;  %v419_v42 = vld [vmem:[%s3461_s2 + $0xf0] sm:$0xff] }
  0x4d   : > { %779 = vmatprep.subr.mxu0 %v454_v57  ;;  %680 = vmatprep.subr.mxu1 %v512_v52  ;;  %v487_v57 = vld [vmem:[%s3461_s2 + $0x310] sm:$0xff]  ;;  %v396_v46 = vld [vmem:[%s3461_s2 + $0x38] sm:$0xff] }
  0x4e   : > { %780 = vmatpush1.msra.mxu0 %v453_v58  ;;  %681 = vmatpush1.msra.mxu1 %v511_v53  ;;  %v476_v58 = vld [vmem:[%s3461_s2 + $0x2b8] sm:$0xff]  ;;  %v407_v45 = vld [vmem:[%s3461_s2 + $0x90] sm:$0xff] }
  0x4f   : > { %781 = vmatprep.subr.mxu0 %v442_v59  ;;  %682 = vmatprep.subr.mxu1 %v500_v54  ;;  %v475_v59 = vld [vmem:[%s3461_s2 + $0x2b0] sm:$0xff]  ;;  %v580_v48 = vld [vmem:[%s3461_s2 + $0x5f8] sm:$0xff] }
  0x50   : > { %782 = vmatpush1.msra.mxu0 %v441_v60  ;;  %683 = vmatpush1.msra.mxu1 %v499_v55  ;;  %v464_v60 = vld [vmem:[%s3461_s2 + $0x258] sm:$0xff]  ;;  %v395_v47 = vld [vmem:[%s3461_s2 + $0x30] sm:$0xff] }
  0x51   : > { %783 = vmatprep.subr.mxu0 %v430_v61  ;;  %684 = vmatprep.subr.mxu1 %v488_v56  ;;  %v463_v61 = vld [vmem:[%s3461_s2 + $0x250] sm:$0xff]  ;;  %v568_v52 = vld [vmem:[%s3461_s2 + $0x598] sm:$0xff] }
  0x52   : > { %784 = vmatpush1.msra.mxu0 %v429_v62  ;;  %685 = vmatpush1.msra.mxu1 %v487_v57  ;;  %v452_v62 = vld [vmem:[%s3461_s2 + $0x1f8] sm:$0xff]  ;;  %v579_v51 = vld [vmem:[%s3461_s2 + $0x5f0] sm:$0xff] }
  0x53   : > { %785 = vmatprep.subr.mxu0 %v418_v63  ;;  %686 = vmatprep.subr.mxu1 %v476_v58  ;;  %v451_v63 = vld [vmem:[%s3461_s2 + $0x1f0] sm:$0xff]  ;;  %v556_v54 = vld [vmem:[%s3461_s2 + $0x538] sm:$0xff] }
  0x54   : > { %786 = vmatpush1.msra.mxu0 %v417_v0  ;;  %687 = vmatpush1.msra.mxu1 %v475_v59  ;;  %v440_v0 = vld [vmem:[%s3461_s2 + $0x198] sm:$0xff]  ;;  %v567_v53 = vld [vmem:[%s3461_s2 + $0x590] sm:$0xff] }
  0x55   : > { %787 = vmatprep.subr.mxu0 %v406_v1  ;;  %688 = vmatprep.subr.mxu1 %v464_v60  ;;  %v439_v1 = vld [vmem:[%s3461_s2 + $0x190] sm:$0xff]  ;;  %v544_v57 = vld [vmem:[%s3461_s2 + $0x4d8] sm:$0xff] }
  0x56   : > { %788 = vmatpush1.msra.mxu0 %v405_v2  ;;  %689 = vmatpush1.msra.mxu1 %v463_v61  ;;  %v428_v2 = vld [vmem:[%s3461_s2 + $0x138] sm:$0xff]  ;;  %v555_v56 = vld [vmem:[%s3461_s2 + $0x530] sm:$0xff] }
  0x57   : > { %789 = vmatprep.subr.mxu0 %v394_v3  ;;  %690 = vmatprep.subr.mxu1 %v452_v62  ;;  %v427_v3 = vld [vmem:[%s3461_s2 + $0x130] sm:$0xff]  ;;  %v532_v59 = vld [vmem:[%s3461_s2 + $0x478] sm:$0xff] }
  0x58   : > { %790 = vmatpush1.msra.mxu0 %v393_v5  ;;  %691 = vmatpush1.msra.mxu1 %v451_v63  ;;  %v416_v5 = vld [vmem:[%s3461_s2 + $0xd8] sm:$0xff]  ;;  %v543_v58 = vld [vmem:[%s3461_s2 + $0x4d0] sm:$0xff] }
  0x59   : > { %824 = vmatmul.mubr.f32.vlgmr.msra.gmra.mxu0 %v2558_v33  ;;  %937 = vmatprep.subr.mxu0 %v578_v6  ;;  %v415_v6 = vld [vmem:[%s3461_s2 + $0xd0] sm:$0xff]  ;;  %v520_v62 = vld [vmem:[%s3461_s2 + $0x418] sm:$0xff] }
  0x5a   : > { %829 = vmatprep.mubr.f32.mxu0 %v2348_v4  ;;  %938 = vmatpush1.msra.mxu0 %v577_v7  ;;  %v404_v7 = vld [vmem:[%s3461_s2 + $0x78] sm:$0xff]  ;;  %v531_v61 = vld [vmem:[%s3461_s2 + $0x470] sm:$0xff] }
  0x5b   : > { %939 = vmatprep.subr.mxu0 %v566_v8  ;;  %692 = vmatprep.subr.mxu1 %v440_v0  ;;  %v403_v8 = vld [vmem:[%s3461_s2 + $0x70] sm:$0xff]  ;;  %v508_v0 = vld [vmem:[%s3461_s2 + $0x3b8] sm:$0xff] }
  0x5c   : > { %940 = vmatpush1.msra.mxu0 %v565_v9  ;;  %693 = vmatpush1.msra.mxu1 %v439_v1  ;;  %v392_v9 = vld [vmem:[%s3461_s2 + $0x18] sm:$0xff]  ;;  %v519_v63 = vld [vmem:[%s3461_s2 + $0x410] sm:$0xff] }
  0x5d   : > { %830 = vmatmul.mubr.f32.gmra.mxu0 %v2578_v39  ;;  %941 = vmatprep.subr.mxu0 %v554_v10  ;;  %v391_v10 = vld [vmem:[%s3461_s2 + $0x10] sm:$0xff] }
  0x5e   : > { %835 = vmatprep.mubr.f32.mxu0 %v2348_v4  ;;  %942 = vmatpush1.msra.mxu0 %v553_v11  ;;  %v576_v11 = vld [vmem:[%s3461_s2 + $0x5d8] sm:$0xff] }
  0x5f   : > { %943 = vmatprep.subr.mxu0 %v542_v12  ;;  %694 = vmatprep.subr.mxu1 %v428_v2  ;;  %v575_v12 = vld [vmem:[%s3461_s2 + $0x5d0] sm:$0xff] }
  0x60   : > { %944 = vmatpush1.msra.mxu0 %v541_v13  ;;  %695 = vmatpush1.msra.mxu1 %v427_v3  ;;  %v564_v13 = vld [vmem:[%s3461_s2 + $0x578] sm:$0xff]  ;;  %v507_v2 = vld [vmem:[%s3461_s2 + $0x3b0] sm:$0xff] }
  0x61   : > { %836 = vmatmul.mubr.f32.gmra.mxu0 %v2595_v44  ;;  %945 = vmatprep.subr.mxu0 %v530_v14  ;;  %v563_v14 = vld [vmem:[%s3461_s2 + $0x570] sm:$0xff]  ;;  %v496_v3 = vld [vmem:[%s3461_s2 + $0x358] sm:$0xff] }
  0x62   : > { %841 = vmatprep.mubr.f32.mxu0 %v2348_v4  ;;  %946 = vmatpush1.msra.mxu0 %v529_v15  ;;  %v552_v15 = vld [vmem:[%s3461_s2 + $0x518] sm:$0xff] }
  0x63   : > { %947 = vmatprep.subr.mxu0 %v518_v16  ;;  %696 = vmatprep.subr.mxu1 %v416_v5  ;;  %v551_v16 = vld [vmem:[%s3461_s2 + $0x510] sm:$0xff] }
  0x64   : > { %948 = vmatpush1.msra.mxu0 %v517_v17  ;;  %697 = vmatpush1.msra.mxu1 %v415_v6  ;;  %v540_v17 = vld [vmem:[%s3461_s2 + $0x4b8] sm:$0xff]  ;;  %v495_v5 = vld [vmem:[%s3461_s2 + $0x350] sm:$0xff] }
  0x65   : > { %842 = vmatmul.mubr.f32.gmra.mxu0 %v2612_v49  ;;  %949 = vmatprep.subr.mxu0 %v506_v18  ;;  %v539_v18 = vld [vmem:[%s3461_s2 + $0x4b0] sm:$0xff]  ;;  %v484_v6 = vld [vmem:[%s3461_s2 + $0x2f8] sm:$0xff] }
  0x66   : > { %950 = vmatpush1.msra.mxu0 %v505_v19  ;;  %1001 = vmatprep.mubr.f32.mxu0 %v2348_v4  ;;  %v528_v19 = vld [vmem:[%s3461_s2 + $0x458] sm:$0xff] }
  0x67   : > { %951 = vmatprep.subr.mxu0 %v494_v20  ;;  %698 = vmatprep.subr.mxu1 %v404_v7  ;;  %v527_v20 = vld [vmem:[%s3461_s2 + $0x450] sm:$0xff] }
  0x68   : > { %952 = vmatpush1.msra.mxu0 %v493_v21  ;;  %699 = vmatpush1.msra.mxu1 %v403_v8  ;;  %v516_v21 = vld [vmem:[%s3461_s2 + $0x3f8] sm:$0xff]  ;;  %v483_v8 = vld [vmem:[%s3461_s2 + $0x2f0] sm:$0xff] }
  0x69   : > { %953 = vmatprep.subr.mxu0 %v482_v22  ;;  %700 = vmatprep.subr.mxu1 %v392_v9  ;;  %v515_v22 = vld [vmem:[%s3461_s2 + $0x3f0] sm:$0xff]  ;;  %v472_v9 = vld [vmem:[%s3461_s2 + $0x298] sm:$0xff] }
  0x6a   : > { %954 = vmatpush1.msra.mxu0 %v481_v23  ;;  %701 = vmatpush1.msra.mxu1 %v391_v10  ;;  %v504_v23 = vld [vmem:[%s3461_s2 + $0x398] sm:$0xff]  ;;  %v471_v10 = vld [vmem:[%s3461_s2 + $0x290] sm:$0xff] }
  0x6b   : > { %955 = vmatprep.subr.mxu0 %v470_v24  ;;  %848 = vmatprep.subr.mxu1 %v576_v11  ;;  %v503_v24 = vld [vmem:[%s3461_s2 + $0x390] sm:$0xff]  ;;  %v460_v11 = vld [vmem:[%s3461_s2 + $0x238] sm:$0xff] }
  0x6c   : > { %956 = vmatpush1.msra.mxu0 %v469_v25  ;;  %735 = vmatmul.mubr.f32.vlgmr.msra.gmra.mxu1 %v2558_v33  ;;  %v492_v25 = vld [vmem:[%s3461_s2 + $0x338] sm:$0xff] }
  0x6d   : > { %957 = vmatprep.subr.mxu0 %v458_v26  ;;  %849 = vmatpush1.msra.mxu1 %v575_v12  ;;  %v491_v26 = vld [vmem:[%s3461_s2 + $0x330] sm:$0xff] }
  0x6e   : > { %958 = vmatpush1.msra.mxu0 %v457_v27  ;;  %740 = vmatprep.mubr.f32.mxu1 %v2348_v4  ;;  %v480_v27 = vld [vmem:[%s3461_s2 + $0x2d8] sm:$0xff] }
  0x6f   : > { %959 = vmatprep.subr.mxu0 %v446_v28  ;;  %850 = vmatprep.subr.mxu1 %v564_v13  ;;  %v479_v28 = vld [vmem:[%s3461_s2 + $0x2d0] sm:$0xff] }
  0x70   : > { %960 = vmatpush1.msra.mxu0 %v445_v29  ;;  %851 = vmatpush1.msra.mxu1 %v563_v14  ;;  %v468_v29 = vld [vmem:[%s3461_s2 + $0x278] sm:$0xff]  ;;  %v459_v13 = vld [vmem:[%s3461_s2 + $0x230] sm:$0xff] }
  0x71   : > { %961 = vmatprep.subr.mxu0 %v434_v30  ;;  %852 = vmatprep.subr.mxu1 %v552_v15  ;;  %v467_v30 = vld [vmem:[%s3461_s2 + $0x270] sm:$0xff]  ;;  %v448_v14 = vld [vmem:[%s3461_s2 + $0x1d8] sm:$0xff] }
  0x72   : > { %962 = vmatpush1.msra.mxu0 %v433_v31  ;;  %741 = vmatmul.mubr.f32.gmra.mxu1 %v2578_v39  ;;  %v456_v31 = vld [vmem:[%s3461_s2 + $0x218] sm:$0xff] }
  0x73   : > { %963 = vmatprep.subr.mxu0 %v422_v32  ;;  %853 = vmatpush1.msra.mxu1 %v551_v16  ;;  %v455_v32 = vld [vmem:[%s3461_s2 + $0x210] sm:$0xff] }
  0x74   : > { %964 = vmatpush1.msra.mxu0 %v421_v34  ;;  %746 = vmatprep.mubr.f32.mxu1 %v2348_v4  ;;  %v444_v34 = vld [vmem:[%s3461_s2 + $0x1b8] sm:$0xff]  ;;  %v447_v16 = vld [vmem:[%s3461_s2 + $0x1d0] sm:$0xff] }
  0x75   : > { %965 = vmatprep.subr.mxu0 %v410_v35  ;;  %854 = vmatprep.subr.mxu1 %v540_v17  ;;  %v436_v17 = vld [vmem:[%s3461_s2 + $0x178] sm:$0xff] }
  0x76   : > { %966 = vmatpush1.msra.mxu0 %v409_v36  ;;  %855 = vmatpush1.msra.mxu1 %v539_v18  ;;  %v443_v36 = vld [vmem:[%s3461_s2 + $0x1b0] sm:$0xff] }
  0x77   : > { %967 = vmatprep.subr.mxu0 %v398_v37  ;;  %856 = vmatprep.subr.mxu1 %v528_v19  ;;  %v432_v37 = vld [vmem:[%s3461_s2 + $0x158] sm:$0xff]  ;;  %v435_v19 = vld [vmem:[%s3461_s2 + $0x170] sm:$0xff] }
  0x78   : > { %968 = vmatpush1.msra.mxu0 %v397_v38  ;;  %747 = vmatmul.mubr.f32.gmra.mxu1 %v2595_v44 }
  0x79   : > { %1002 = vmatmul.mubr.f32.vlgmr.msra.gmra.mxu0 %v2558_v33  ;;  %857 = vmatpush1.msra.mxu1 %v527_v20  ;;  %v424_v20 = vld [vmem:[%s3461_s2 + $0x118] sm:$0xff] }
  0x7a   : > { %1007 = vmatprep.mubr.f32.mxu0 %v2348_v4  ;;  %752 = vmatprep.mubr.f32.mxu1 %v2348_v4 }
  0x7b   : > { %858 = vmatprep.subr.mxu1 %v516_v21 }
  0x7c   : > { %859 = vmatpush1.msra.mxu1 %v515_v22  ;;  %v423_v22 = vld [vmem:[%s3461_s2 + $0x110] sm:$0xff] }
  0x7d   : > { %1008 = vmatmul.mubr.f32.gmra.mxu0 %v2578_v39  ;;  %860 = vmatprep.subr.mxu1 %v504_v23  ;;  %v412_v23 = vld [vmem:[%s3461_s2 + $0xb8] sm:$0xff] }
  0x7e   : > { %1013 = vmatprep.mubr.f32.mxu0 %v2348_v4  ;;  %753 = vmatmul.mubr.f32.gmra.mxu1 %v2612_v49 }
  0x7f   : > { %861 = vmatpush1.msra.mxu1 %v503_v24  ;;  %912 = vmatprep.mubr.f32.mxu1 %v2348_v4 }
  0x80   : > { %862 = vmatprep.subr.mxu1 %v492_v25  ;;  %v411_v25 = vld [vmem:[%s3461_s2 + $0xb0] sm:$0xff] }
  0x81   : > { %1014 = vmatmul.mubr.f32.gmra.mxu0 %v2595_v44  ;;  %863 = vmatpush1.msra.mxu1 %v491_v26  ;;  %v400_v26 = vld [vmem:[%s3461_s2 + $0x58] sm:$0xff] }
  0x82   : > { %1019 = vmatprep.mubr.f32.mxu0 %v2348_v4  ;;  %864 = vmatprep.subr.mxu1 %v480_v27 }
  0x83   : > { %865 = vmatpush1.msra.mxu1 %v479_v28  ;;  %v399_v28 = vld [vmem:[%s3461_s2 + $0x50] sm:$0xff]  ;;  %s2286_s2 = scalar_lea.vmem %s1947_s29, 128 }
  0x84   : > { %866 = vmatprep.subr.mxu1 %v468_v29  ;;  %v3105_v29 = vld [vmem:[%s3450_s6 + $0x18] sm:$0xff]  ;;  %p2287_p12 = scmp.ne.s32.totalorder %s1947_s29, %s2286_s2  ;;  %p2294_p2 = scmp.lt.s32.totalorder %s2292_s21, %s2286_s2 }
  0x85   : > { %1020 = vmatmul.mubr.f32.gmra.mxu0 %v2612_v49  ;;  %867 = vmatpush1.msra.mxu1 %v467_v30 }
  0x86   : > { %868 = vmatprep.subr.mxu1 %v456_v31  ;;  %v3110_v31 = vld [vmem:[%s3450_s6 + $0x10] sm:$0xff]  ;;  %p2288_p13 = pnand %p2287_p12, %p2443_p5  ;;  %p2295_p3 = por %p2294_p2, %p2293_p1 }
  0x87   : > { %869 = vmatpush1.msra.mxu1 %v455_v32 }
  0x88   : > { %870 = vmatprep.subr.mxu1 %v444_v34  ;;  %v3118_v34 = vld [vmem:[%s3450_s6 + $0x8] sm:$0xff]  ;;  %p2289_p0 = pneg %p2288_p13 }
  0x89   : > { %871 = vmatpush1.msra.mxu1 %v443_v36 }
  0x8a   : > { %872 = vmatprep.subr.mxu1 %v432_v37  ;;  %v3126_v37 = vld [vmem:[%s3450_s6] sm:$0xff]  ;;  %p2296_p4 = pnand %p2295_p3, %p2289_p0 }
  0x8b   : > { %873 = vmatpush1.msra.mxu1 %v431_v40 }
  0x8c   : > { %874 = vmatprep.subr.mxu1 %v420_v41 }
  0x8d   : > { %875 = vmatpush1.msra.mxu1 %v419_v42 }
  0x8e   : > { %876 = vmatprep.subr.mxu1 %v408_v43 }
  0x8f   : > { %877 = vmatpush1.msra.mxu1 %v407_v45 }
  0x90   : > { %878 = vmatprep.subr.mxu1 %v396_v46 }
  0x91   : > { %879 = vmatpush1.msra.mxu1 %v395_v47 }
  0x92   : > { %913 = vmatmul.mubr.f32.vlgmr.msra.gmra.mxu1 %v2558_v33  ;;  %1026 = vmatprep.subr.mxu1 %v580_v48 }
  0x93   : > { %918 = vmatprep.mubr.f32.mxu1 %v2348_v4  ;;  %1027 = vmatpush1.msra.mxu1 %v579_v51 }
  0x94   : > { %1028 = vmatprep.subr.mxu1 %v568_v52 }
  0x95   : > { %1029 = vmatpush1.msra.mxu1 %v567_v53 }
  0x96   : > { %919 = vmatmul.mubr.f32.gmra.mxu1 %v2578_v39  ;;  %1030 = vmatprep.subr.mxu1 %v556_v54 }
  0x97   : > { %924 = vmatprep.mubr.f32.mxu1 %v2348_v4  ;;  %1031 = vmatpush1.msra.mxu1 %v555_v56 }
  0x98   : > { %1032 = vmatprep.subr.mxu1 %v544_v57 }
  0x99   : > { %1033 = vmatpush1.msra.mxu1 %v543_v58 }
  0x9a   : > { %925 = vmatmul.mubr.f32.gmra.mxu1 %v2595_v44  ;;  %1034 = vmatprep.subr.mxu1 %v532_v59 }
  0x9b   : > { %930 = vmatprep.mubr.f32.mxu1 %v2348_v4  ;;  %1035 = vmatpush1.msra.mxu1 %v531_v61  ;;  %v1115_v61 = vld [vmem:[%s3448_s4] sm:$0xff] }
  0x9c   : > { %1036 = vmatprep.subr.mxu1 %v520_v62 }
  0x9d   : > { %1037 = vmatpush1.msra.mxu1 %v519_v63 }
  0x9e   : > { %931 = vmatmul.mubr.f32.gmra.mxu1 %v2612_v49  ;;  %1038 = vmatprep.subr.mxu1 %v508_v0 }
  0x9f   : > { %1039 = vmatpush1.msra.mxu1 %v507_v2  ;;  %1090 = vmatprep.mubr.f32.mxu1 %v2348_v4  ;;  %v1116_v2 = vld [vmem:[%s3448_s4 + $0x8] sm:$0xff] }
  0xa0   : > { %1040 = vmatprep.subr.mxu1 %v496_v3 }
  0xa1   : > { %1041 = vmatpush1.msra.mxu1 %v495_v5 }
  0xa2   : > { %1042 = vmatprep.subr.mxu1 %v484_v6 }
  0xa3   : > { %1043 = vmatpush1.msra.mxu1 %v483_v8 }
  0xa4   : > { %1044 = vmatprep.subr.mxu1 %v472_v9  ;;  %v3201_v9 = vld [vmem:[%s3448_s4 + $0x10] sm:$0xff] }
  0xa5   : > { %1045 = vmatpush1.msra.mxu1 %v471_v10 }
  0xa6   : > { %1046 = vmatprep.subr.mxu1 %v460_v11 }
  0xa7   : > { %1047 = vmatpush1.msra.mxu1 %v459_v13 }
  0xa8   : > { %1048 = vmatprep.subr.mxu1 %v448_v14 }
  0xa9   : > { %1049 = vmatpush1.msra.mxu1 %v447_v16 }
  0xaa   : > { %1050 = vmatprep.subr.mxu1 %v436_v17 }
  0xab   : > { %1051 = vmatpush1.msra.mxu1 %v435_v19 }
  0xac   : > { %1052 = vmatprep.subr.mxu1 %v424_v20 }
  0xad   : > { %1053 = vmatpush1.msra.mxu1 %v423_v22 }
  0xae   : > { %1054 = vmatprep.subr.mxu1 %v412_v23 }
  0xaf   : > { %1055 = vmatpush1.msra.mxu1 %v411_v25 }
  0xb0   : > { %1056 = vmatprep.subr.mxu1 %v400_v26 }
  0xb1   : > { %1057 = vmatpush1.msra.mxu1 %v399_v28 }
  0xb2   : > { %2176 = vmatprep.subr.mxu1 %v3105_v29  ;;  %1091 = vmatmul.mubr.f32.vlgmr.msra.gmra.mxu1 %v2558_v33 }
  0xb3   : > { %2177 = vmatpush3.msra.mxu1 %v3105_v29  ;;  %1096 = vmatprep.mubr.f32.mxu1 %v2348_v4 }
  0xb4   : > { %2178 = vmatprep.subr.mxu1 %v3110_v31 }
  0xb5   : > { %2179 = vmatpush3.msra.mxu1 %v3110_v31 }
  0xb6   : > { %2180 = vmatprep.subr.mxu1 %v3118_v34  ;;  %1097 = vmatmul.mubr.f32.gmra.mxu1 %v2578_v39 }
  0xb7   : > { %2181 = vmatpush3.msra.mxu1 %v3118_v34  ;;  %1102 = vmatprep.mubr.f32.mxu1 %v2348_v4 }
  0xb8   : > { %2182 = vmatprep.subr.mxu1 %v3126_v37 }
  0xb9   : > { %2183 = vmatpush3.msra.mxu1 %v3126_v37 }
  0xba   : > { %1103 = vmatmul.mubr.f32.gmra.mxu1 %v2595_v44 }
  0xbb   : > { %1108 = vmatprep.mubr.f32.mxu1 %v2348_v4 }
  0xbe   : > { %1109 = vmatmul.mubr.f32.gmra.mxu1 %v2612_v49 }
  0xf9   : > { %v2957_v35 = vpop.f32.mrf.mxu0 }
  0xfb   : > { %v649_v38 = vpop.f32.mrf.mxu0 }
  0xfc   : > { %1187 = vmatprep.mubr.f32.mxu0 %v649_v38 }
  0xfd   : > { %v2989_v50 = vpop.f32.mrf.mxu0 }
  0xff   : > { %v3005_v55 = vpop.f32.mrf.mxu0 }
 0x101   : > { %v3021_v60 = vpop.f32.mrf.mxu0 }
 0x103   : > { %v3037_v1 = vpop.f32.mrf.mxu0 }
 0x105   : > { %v3053_v7 = vpop.f32.mrf.mxu0 }
 0x107   : > { %v3067_v12 = vpop.f32.mrf.mxu0 }
 0x119   : > { %v825_v15 = vpop.f32.mrf.mxu0 }
 0x11b   : > { %v827_v18 = vpop.f32.mrf.mxu0 }
 0x11d   : > { %v831_v21 = vpop.f32.mrf.mxu0 }
 0x11f   : > { %v833_v24 = vpop.f32.mrf.mxu0 }
 0x121   : > { %v837_v27 = vpop.f32.mrf.mxu0 }
 0x123   : > { %v839_v30 = vpop.f32.mrf.mxu0 }
 0x125   : > { %v843_v32 = vpop.f32.mrf.mxu0 }
 0x127   : > { %v845_v36 = vpop.f32.mrf.mxu0 }
 0x128   : > { %1147 = vmatprep.subr.mxu0 %v845_v36 }
 0x129   : > { %1148 = vmatpush1.xpose.msra.mxu0 %v843_v32 }
 0x12a   : > { %1149 = vmatprep.subr.mxu0 %v839_v30 }
 0x12c   : > { %v736_v42 = vpop.f32.mrf.mxu1 }
 0x12d   : > { %1150 = vmatpush1.xpose.msra.mxu0 %v837_v27 }
 0x12e   : > { %1151 = vmatprep.subr.mxu0 %v833_v24  ;;  %v738_v43 = vpop.f32.mrf.mxu1 }
 0x131   : > { %1152 = vmatpush1.xpose.msra.mxu0 %v831_v21 }
 0x132   : > { %1153 = vmatprep.subr.mxu0 %v827_v18  ;;  %v742_v45 = vpop.f32.mrf.mxu1 }
 0x134   : > { %v744_v46 = vpop.f32.mrf.mxu1 }
 0x135   : > { %1154 = vmatpush1.xpose.msra.mxu0 %v825_v15  ;;  %v3208_v15 = vld [vmem:[%s3448_s4 + $0x18] sm:$0xff] }
 0x138   : > { %1188 = vmatmul.mubr.f32.vlgmr.msra.gmra.mxu0 %v2957_v35  ;;  %v3158_v47 = vpop.f32.mrf.mxu1 }
 0x139   : > { %1192 = vmatprep.mubr.f32.mxu0 %v3005_v55  ;;  %v3139_v33 = vpop.f32.mrf.mxu0 }
 0x13a   : > { %v3160_v48 = vpop.f32.mrf.mxu1 }
 0x13b   : > { %v3141_v39 = vpop.f32.mrf.mxu0 }
 0x13c   : > { %1193 = vmatmul.mubr.f32.gmra.mxu0 %v2989_v50 }
 0x13d   : > { %1197 = vmatprep.mubr.f32.mxu0 %v3037_v1  ;;  %v3145_v44 = vpop.f32.mrf.mxu0 }
 0x13e   : > { %v3162_v50 = vpop.f32.mrf.mxu1 }
 0x13f   : > { %v3147_v38 = vpop.f32.mrf.mxu0 }
 0x140   : > { %1198 = vmatmul.mubr.f32.gmra.mxu0 %v3021_v60  ;;  %v3164_v51 = vpop.f32.mrf.mxu1 }
 0x141   : > { %1202 = vmatprep.mubr.f32.mxu0 %v3067_v12  ;;  %v3151_v49 = vpop.f32.mrf.mxu0 }
 0x143   : > { %v3153_v35 = vpop.f32.mrf.mxu0 }
 0x144   : > { %1203 = vmatmul.mubr.f32.gmra.mxu0 %v3053_v7 }
 0x145   : > { %v3156_v40 = vpop.f32.mrf.mxu0  ;;  %1532 = vmatprep.mubr.f32.mxu0 %v738_v43 }
 0x147   : > { %v1023_v41 = vpop.f32.mrf.mxu0 }
 0x148   : > { %1387 = vmatprep.subr.mxu1 %v1023_v41 }
 0x152   : > { %v3166_v52 = vpop.f32.mrf.mxu1 }
 0x154   : > { %v3168_v53 = vpop.f32.mrf.mxu1 }
 0x156   : > { %v3170_v54 = vpop.f32.mrf.mxu1 }
 0x158   : > { %v3172_v55 = vpop.f32.mrf.mxu1 }
 0x15a   : > { %v3174_v56 = vpop.f32.mrf.mxu1 }
 0x15c   : > { %v3176_v57 = vpop.f32.mrf.mxu1 }
 0x15e   : > { %v3178_v58 = vpop.f32.mrf.mxu1 }
 0x160   : > { %v3180_v59 = vpop.f32.mrf.mxu1 }
 0x161   : > { %1492 = vmatprep.subr.mxu0 %v3180_v59 }
 0x162   : > { %1493 = vmatpush1.xpose.msra.mxu0 %v3178_v58 }
 0x163   : > { %1494 = vmatprep.subr.mxu0 %v3176_v57 }
 0x166   : > { %1495 = vmatpush1.xpose.msra.mxu0 %v3174_v56 }
 0x167   : > { %1496 = vmatprep.subr.mxu0 %v3172_v55 }
 0x16a   : > { %1497 = vmatpush1.xpose.msra.mxu0 %v3170_v54 }
 0x16b   : > { %1498 = vmatprep.subr.mxu0 %v3168_v53 }
 0x16e   : > { %1499 = vmatpush1.xpose.msra.mxu0 %v3166_v52 }
 0x171   : > { %1533 = vmatmul.mubr.f32.vlgmr.msra.gmra.mxu0 %v736_v42 }
 0x172   : > { %1537 = vmatprep.mubr.f32.mxu0 %v744_v46 }
 0x175   : > { %1538 = vmatmul.mubr.f32.gmra.mxu0 %v742_v45 }
 0x176   : > { %1771 = vmatprep.mubr.f32.mxu0 %v2348_v4 }
 0x1f8   : > { %v1189_v60 = vpop.f32.mrf.mxu0 }
 0x1f9   : > { %v1208_v62 = vmul.f32 0.5, %v1189_v60 }
 0x1fa   : > { %v1191_v63 = vpop.f32.mrf.mxu0 }
 0x1fb   : > { %v1212_v0 = vadd.f32 %v1208_v62, %v1115_v61 }
 0x1fc   : > { %v1194_v1 = vpop.f32.mrf.mxu0 }
 0x1fd   : > { %v1209_v3 = vmul.f32 0.5, %v1194_v1  ;;  %v1217_v5 = vsel %vm1216_vm0, %v1212_v0, -inf }
 0x1fe   : > { %1218 = vmax.xlane.f32.xlu0 %v1217_v5  ;;  %v1196_v6 = vpop.f32.mrf.mxu0 }
 0x1ff   : > { %v1213_v7 = vadd.f32 %v1209_v3, %v1116_v2 }
 0x200   : > { %v1199_v8 = vpop.f32.mrf.mxu0 }
 0x201   : > { %v1210_v10 = vmul.f32 0.5, %v1199_v8  ;;  %v1220_v11 = vsel %vm1216_vm0, %v1213_v7, -inf }
 0x202   : > { %1221 = vmax.xlane.f32.xlu0 %v1220_v11  ;;  %v1201_v12 = vpop.f32.mrf.mxu0 }
 0x203   : > { %v1214_v13 = vadd.f32 %v1210_v10, %v3201_v9 }
 0x204   : > { %v1204_v14 = vpop.f32.mrf.mxu0 }
 0x205   : > { %v1211_v16 = vmul.f32 0.5, %v1204_v14  ;;  %v1223_v17 = vsel %vm1216_vm0, %v1214_v13, -inf }
 0x206   : > { %1224 = vmax.xlane.f32.xlu1 %v1223_v17  ;;  %v1206_v18 = vpop.f32.mrf.mxu0 }
 0x207   : > { %v1215_v19 = vadd.f32 %v1211_v16, %v3208_v15 }
 0x209   : > { %v1226_v20 = vsel %vm1216_vm0, %v1215_v19, -inf }
 0x20a   : > { %1227 = vmax.xlane.f32.xlu1 %v1226_v20 }
 0x231   : > { %v1534_v1 = vpop.f32.mrf.mxu0 }
 0x232   : > { %v1553_v3 = vmul.f32 0.5, %v1534_v1 }
 0x233   : > { %v1536_v5 = vpop.f32.mrf.mxu0 }
 0x234   : > { %v3217_v6 = vadd.f32 %v1553_v3, %v1115_v61 }
 0x235   : > { %v1539_v8 = vpop.f32.mrf.mxu0 }
 0x236   : > { %v1554_v10 = vmul.f32 0.5, %v1539_v8 }
 0x237   : > { %v1541_v11 = vpop.f32.mrf.mxu0 }
 0x238   : > { %v3221_v12 = vadd.f32 %v1554_v10, %v1116_v2 }
 0x23a   : > { %v1564_v14 = vsel %vm1216_vm0, %v3221_v12, -inf }
 0x287   : > { %v1219_v21 = vpop.xlane.xlu0 %1218 }
 0x288   : > { %v1229_v22 = vsub.f32 %v1212_v0, %v1219_v21 }
 0x28a   : > { %v1233_v23 = vmul.f32 1.442695, %v1229_v22 }
 0x28b   : > { %v1222_v24 = vpop.xlane.xlu0 %1221 }
 0x28c   : > { %2252 = vpow2.f32 %v1233_v23  ;;  %v1230_v25 = vsub.f32 %v1213_v7, %v1222_v24  ;;  %v1561_v7 = vsel %vm1216_vm0, %v3217_v6, -inf }
 0x28e   : > { %v1235_v26 = vmul.f32 1.442695, %v1230_v25 }
 0x28f   : > { %v1225_v27 = vpop.xlane.xlu1 %1224 }
 0x290   : > { %2254 = vpow2.f32 %v1235_v26  ;;  %v1231_v28 = vsub.f32 %v1214_v13, %v1225_v27  ;;  %v1092_v13 = vpop.f32.mrf.mxu1 }
 0x292   : > { %v1237_v30 = vmul.f32 1.442695, %v1231_v28  ;;  %v1094_v16 = vpop.f32.mrf.mxu1 }
 0x293   : > { %v1228_v32 = vpop.xlane.xlu1 %1227 }
 0x294   : > { %2256 = vpow2.f32 %v1237_v30  ;;  %v1232_v36 = vsub.f32 %v1215_v19, %v1228_v32  ;;  %v1098_v17 = vpop.f32.mrf.mxu1 }
 0x296   : > { %v1239_v41 = vmul.f32 1.442695, %v1232_v36  ;;  %v1100_v18 = vpop.f32.mrf.mxu1 }
 0x298   : > { %2258 = vpow2.f32 %v1239_v41  ;;  %v1104_v19 = vpop.f32.mrf.mxu1 }
 0x299   : > { %v2253_v42 = vpop.eup %2252 }
 0x29a   : > { %v1241_v43 = vsel %vm1216_vm0, %v2253_v42, 0.0  ;;  %v1106_v61 = vpop.f32.mrf.mxu1 }
 0x29b   : > { %1242 = vadd.xlane.f32.xlu0 %v1241_v43 }
 0x29c   : > { %v1110_v20 = vpop.f32.mrf.mxu1 }
 0x29d   : > { %v2255_v45 = vpop.eup %2254 }
 0x29e   : > { %v1244_v46 = vsel %vm1216_vm0, %v2255_v45, 0.0  ;;  %v1112_v21 = vpop.f32.mrf.mxu1 }
 0x29f   : > { %1245 = vadd.xlane.f32.xlu1 %v1244_v46  ;;  %1731 = vmatprep.subr.mxu0 %v1112_v21 }
 0x2a0   : > { %1732 = vmatpush1.msra.mxu0 %v1110_v20 }
 0x2a1   : > { %v2257_v60 = vpop.eup %2256  ;;  %1733 = vmatprep.subr.mxu0 %v1106_v61 }
 0x2a2   : > { %v1247_v62 = vsel %vm1216_vm0, %v2257_v60, 0.0  ;;  %1734 = vmatpush1.msra.mxu0 %v1104_v19 }
 0x2a3   : > { %1248 = vadd.xlane.f32.xlu0 %v1247_v62  ;;  %1735 = vmatprep.subr.mxu0 %v1100_v18 }
 0x2a4   : > { %1736 = vmatpush1.msra.mxu0 %v1098_v17 }
 0x2a5   : > { %v2259_v63 = vpop.eup %2258  ;;  %1737 = vmatprep.subr.mxu0 %v1094_v16 }
 0x2a6   : > { %v1250_v0 = vsel %vm1216_vm0, %v2259_v63, 0.0  ;;  %1738 = vmatpush1.msra.mxu0 %v1092_v13 }
 0x2a7   : > { %1251 = vadd.xlane.f32.xlu1 %v1250_v0  ;;  %1562 = vmax.xlane.f32.xlu0 %v1561_v7 }
 0x2ab   : > { %1565 = vmax.xlane.f32.xlu1 %v1564_v14 }
 0x324   : > { %v1243_v2 = vpop.xlane.xlu0 %1242 }
 0x325   : > { %2260 = vrcp.f32 %v1243_v2 }
 0x328   : > { %v1246_v22 = vpop.xlane.xlu1 %1245 }
 0x329   : > { %2262 = vrcp.f32 %v1246_v22 }
 0x32c   : > { %v1249_v23 = vpop.xlane.xlu0 %1248 }
 0x32d   : > { %2264 = vrcp.f32 %v1249_v23 }
 0x330   : > { %v1252_v24 = vpop.xlane.xlu1 %1251 }
 0x331   : > { %2266 = vrcp.f32 %v1252_v24 }
 0x332   : > { %v2261_v25 = vpop.eup %2260 }
 0x333   : > { %v1257_v26 = vmul.f32 %v2261_v25, %v2253_v42 }
 0x335   : > { %2184 = vmatprep.mubr.msk.f32.mxu1 %vm1216_vm0, %v1257_v26 }
 0x336   : > { %v2263_v27 = vpop.eup %2262 }
 0x337   : > { %v1258_v28 = vmul.f32 %v2263_v27, %v2255_v45 }
 0x339   : > { %2185 = vmatmul.mubr.msk.f32.vlgmr.msra.gmra.mxu1 %vm1216_vm0, %v1258_v28 }
 0x33a   : > { %v2265_v30 = vpop.eup %2264  ;;  %1388 = vmatpush1.msra.mxu1 %v3156_v40 }
 0x33b   : > { %1389 = vmatprep.subr.mxu1 %v3153_v35  ;;  %v1259_v32 = vmul.f32 %v2265_v30, %v2257_v60 }
 0x33c   : > { %1390 = vmatpush1.msra.mxu1 %v3151_v49 }
 0x33d   : > { %1391 = vmatprep.subr.mxu1 %v3147_v38  ;;  %2187 = vmatprep.mubr.msk.f32.mxu1 %vm1216_vm0, %v1259_v32  ;;  %v1566_v38 = vpop.xlane.xlu1 %1565 }
 0x33e   : > { %v2267_v36 = vpop.eup %2266  ;;  %1392 = vmatpush1.msra.mxu1 %v3145_v44 }
 0x33f   : > { %1393 = vmatprep.subr.mxu1 %v3141_v39  ;;  %v1260_v41 = vmul.f32 %v2267_v36, %v2259_v63 }
 0x340   : > { %1394 = vmatpush1.msra.mxu1 %v3139_v33 }
 0x341   : > { %2204 = vmatprep.subr.mxu1 %v3180_v59  ;;  %2188 = vmatmul.mubr.msk.f32.gmra.mxu1 %vm1216_vm0, %v1260_v41 }
 0x342   : > { %1427 = vmatprep.mubr.f32.mxu1 %v2348_v4 }
 0x345   : > { %2125 = vmatmul.mubr.msk.f32.vlgmr.msra.gmra.mxu1 %vm1216_vm0, %v1257_v26 }
 0x346   : > { %2208 = vmatpush1.xpose.msra.mxu1 %v3178_v58  ;;  %1433 = vmatprep.mubr.f32.mxu1 %v2348_v4 }
 0x347   : > { %2205 = vmatprep.subr.mxu1 %v3176_v57 }
 0x349   : > { %2126 = vmatmul.mubr.msk.f32.gmra.mxu1 %vm1216_vm0, %v1258_v28 }
 0x34a   : > { %2209 = vmatpush1.xpose.msra.mxu1 %v3174_v56  ;;  %1439 = vmatprep.mubr.f32.mxu1 %v2348_v4 }
 0x34b   : > { %2206 = vmatprep.subr.mxu1 %v3172_v55 }
 0x34d   : > { %2127 = vmatmul.mubr.msk.f32.gmra.mxu1 %vm1216_vm0, %v1259_v32 }
 0x34e   : > { %2210 = vmatpush1.xpose.msra.mxu1 %v3170_v54  ;;  %1445 = vmatprep.mubr.f32.mxu1 %v2348_v4 }
 0x34f   : > { %2207 = vmatprep.subr.mxu1 %v3168_v53 }
 0x351   : > { %2128 = vmatmul.mubr.msk.f32.gmra.mxu1 %vm1216_vm0, %v1260_v41  ;;  %v2147_v41 = vld [vmem:[%s3447_s3 + $0x70] sm:$0xff] }
 0x352   : > { %2211 = vmatpush1.xpose.msra.mxu1 %v3166_v52  ;;  %1542 = vmatprep.mubr.f32.mxu1 %v3160_v48 }
 0x353   : > { %2190 = vmatprep.subr.mxu1 %v3105_v29 }
 0x355   : > { %1543 = vmatmul.mubr.f32.vlgmr.msra.gmra.mxu1 %v3158_v47  ;;  %v1574_v47 = vsub.f32 %v3221_v12, %v1566_v38  ;;  %v1457_v38 = vld [vmem:[%s3447_s3 + $0x28] sm:$0xff] }
 0x356   : > { %1547 = vmatprep.mubr.f32.mxu1 %v3164_v51  ;;  %2191 = vmatpush3.msra.mxu1 %v3105_v29 }
 0x357   : > { %2192 = vmatprep.subr.mxu1 %v3110_v31  ;;  %v1579_v51 = vmul.f32 1.442695, %v1574_v47 }
 0x358   : > { %2193 = vmatpush3.msra.mxu1 %v3110_v31 }
 0x359   : > { %1548 = vmatmul.mubr.f32.gmra.mxu1 %v3162_v50  ;;  %2194 = vmatprep.subr.mxu1 %v3118_v34 }
 0x35a   : > { %2195 = vmatpush3.msra.mxu1 %v3118_v34 }
 0x35b   : > { %2196 = vmatprep.subr.mxu1 %v3126_v37 }
 0x35c   : > { %2197 = vmatpush3.msra.mxu1 %v3126_v37  ;;  %v1563_v37 = vpop.xlane.xlu0 %1562 }
 0x35d   : > { %v1573_v44 = vsub.f32 %v3217_v6, %v1563_v37  ;;  %v2148_v37 = vld [vmem:[%s3447_s3 + $0x78] sm:$0xff] }
 0x35f   : > { %v1577_v40 = vmul.f32 1.442695, %v1573_v44  ;;  %v2145_v44 = vld [vmem:[%s3447_s3 + $0x60] sm:$0xff] }
 0x361   : > { %2268 = vpow2.f32 %v1577_v40  ;;  %v2144_v40 = vld [vmem:[%s3447_s3 + $0x58] sm:$0xff] }
 0x362   : > { %2270 = vpow2.f32 %v1579_v51 }
 0x36e   : > { %v2269_v45 = vpop.eup %2268 }
 0x36f   : > { %v1585_v62 = vsel %vm1216_vm0, %v2269_v45, 0.0  ;;  %v2271_v0 = vpop.eup %2270 }
 0x370   : > { %v1588_v1 = vsel %vm1216_vm0, %v2271_v0, 0.0 }
 0x3f9   : > { %v2186_v29 = vpop.f32.mrf.mxu1 }
 0x3fa   : > { %1360 = vst.msk [vmem:[%s3268_s12 + $0x8] sm:$0xff] %vm1358_vm1, %v2186_v29  ;;  %v2146_v29 = vld [vmem:[%s3447_s3 + $0x68] sm:$0xff] }
 0x3fb   : > { %v1339_v31 = vpop.f32.mrf.mxu1 }
 0x3fc   : > { %1359 = vst.msk [vmem:[%s3268_s12] sm:$0xff] %vm1358_vm1, %v1339_v31 }
 0x401   : > { %v2189_v34 = vpop.f32.mrf.mxu1 }
 0x402   : > { %1362 = vst.msk [vmem:[%s3268_s12 + $0x18] sm:$0xff] %vm1358_vm1, %v2189_v34 }
 0x403   : > { %v1349_v33 = vpop.f32.mrf.mxu1 }
 0x404   : > { %1361 = vst.msk [vmem:[%s3268_s12 + $0x10] sm:$0xff] %vm1358_vm1, %v1349_v33  ;;  %v1458_v33 = vld [vmem:[%s3447_s3 + $0x30] sm:$0xff] }
 0x405   : > { %v3278_v39 = vpop.f32.mrf.mxu1 }
 0x407   : > { %v3281_v49 = vpop.f32.mrf.mxu1 }
 0x409   : > { %v3283_v35 = vpop.f32.mrf.mxu1 }
 0x40b   : > { %v3286_v48 = vpop.f32.mrf.mxu1 }
 0x40d   : > { %v3288_v50 = vpop.f32.mrf.mxu1 }
 0x40f   : > { %v3290_v52 = vpop.f32.mrf.mxu1 }
 0x411   : > { %v3292_v53 = vpop.f32.mrf.mxu1 }
 0x413   : > { %v3294_v54 = vpop.f32.mrf.mxu1 }
 0x415   : > { %v1544_v55 = vpop.f32.mrf.mxu1 }
 0x416   : > { %v1555_v56 = vmul.f32 0.5, %v1544_v55 }
 0x417   : > { %v1546_v57 = vpop.f32.mrf.mxu1 }
 0x418   : > { %v1559_v58 = vadd.f32 %v1555_v56, %v3201_v9  ;;  %v1456_v56 = vld [vmem:[%s3447_s3 + $0x20] sm:$0xff] }
 0x419   : > { %v1549_v59 = vpop.f32.mrf.mxu1 }
 0x41a   : > { %v1556_v42 = vmul.f32 0.5, %v1549_v59  ;;  %v1567_v43 = vsel %vm1216_vm0, %v1559_v58, -inf }
 0x41b   : > { %v1551_v46 = vpop.f32.mrf.mxu1  ;;  %1568 = vmax.xlane.f32.xlu0 %v1567_v43  ;;  %v1455_v43 = vld [vmem:[%s3447_s3 + $0x18] sm:$0xff] }
 0x41c   : > { %v1560_v60 = vadd.f32 %v1556_v42, %v3208_v15  ;;  %v2142_v46 = vld [vmem:[%s3447_s3 + $0x48] sm:$0xff] }
 0x41e   : > { %v1570_v63 = vsel %vm1216_vm0, %v1560_v60, -inf }
 0x41f   : > { %1586 = vadd.xlane.f32.xlu0 %v1585_v62  ;;  %1571 = vmax.xlane.f32.xlu1 %v1570_v63  ;;  %v1465_v62 = vmul.f32 %v1457_v38, %v3290_v52  ;;  %v2141_v63 = vld [vmem:[%s3447_s3 + $0x40] sm:$0xff]  ;;  %v1463_v52 = vmul.f32 %v1455_v43, %v3286_v48 }
 0x423   : > { %1589 = vadd.xlane.f32.xlu1 %v1588_v1 }
 0x4a4   : > { %v1569_v9 = vpop.xlane.xlu0 %1568 }
 0x4a5   : > { %v1575_v3 = vsub.f32 %v1559_v58, %v1569_v9  ;;  %v2143_v58 = vld [vmem:[%s3447_s3 + $0x50] sm:$0xff]  ;;  %v1464_v9 = vmul.f32 %v1456_v56, %v3288_v50 }
 0x4a7   : > { %v1581_v5 = vmul.f32 1.442695, %v1575_v3 }
 0x4a8   : > { %v1587_v6 = vpop.xlane.xlu0 %1586  ;;  %v1572_v7 = vpop.xlane.xlu1 %1571 }
 0x4a9   : > { %2272 = vpow2.f32 %v1581_v5  ;;  %v1576_v8 = vsub.f32 %v1560_v60, %v1572_v7 }
 0x4aa   : > { %2274 = vrcp.f32 %v1587_v6  ;;  %v1452_v6 = vld [vmem:[%s3447_s3] sm:$0xff] }
 0x4ab   : > { %v1583_v10 = vmul.f32 1.442695, %v1576_v8 }
 0x4ac   : > { %v1590_v15 = vpop.xlane.xlu1 %1589 }
 0x4ad   : > { %2276 = vpow2.f32 %v1583_v10 }
 0x4ae   : > { %2278 = vrcp.f32 %v1590_v15 }
 0x4b6   : > { %v2273_v11 = vpop.eup %2272 }
 0x4b7   : > { %v2275_v12 = vpop.eup %2274  ;;  %v1591_v13 = vsel %vm1216_vm0, %v2273_v11, 0.0 }
 0x4b8   : > { %1592 = vadd.xlane.f32.xlu0 %v1591_v13  ;;  %v1601_v14 = vmul.f32 %v2275_v12, %v2269_v45  ;;  %v1466_v45 = vmul.f32 %v1458_v33, %v3292_v53  ;;  %v1453_v53 = vld [vmem:[%s3447_s3 + $0x8] sm:$0xff]  ;;  %v1460_v13 = vmul.f32 %v1452_v6, %v3278_v39 }
 0x4b9   : > { %v1461_v50 = vmul.f32 %v1453_v53, %v3281_v49 }
 0x4ba   : > { %v2277_v16 = vpop.eup %2276  ;;  %2198 = vmatprep.mubr.msk.f32.mxu1 %vm1216_vm0, %v1601_v14  ;;  %2137 = vmatmul.mubr.msk.f32.vlgmr.msra.gmra.mxu0 %vm1216_vm0, %v1601_v14 }
 0x4bb   : > { %v2279_v17 = vpop.eup %2278  ;;  %1777 = vmatprep.mubr.f32.mxu0 %v2348_v4  ;;  %v1594_v18 = vsel %vm1216_vm0, %v2277_v16, 0.0 }
 0x4bc   : > { %v1602_v19 = vmul.f32 %v2279_v17, %v2271_v0  ;;  %1595 = vadd.xlane.f32.xlu1 %v1594_v18  ;;  %v1897_v17 = vld [vmem:[%s383_s11] sm:$0xff] }
 0x4be   : > { %2199 = vmatmul.mubr.msk.f32.vlgmr.msra.gmra.mxu1 %vm1216_vm0, %v1602_v19  ;;  %2138 = vmatmul.mubr.msk.f32.gmra.mxu0 %vm1216_vm0, %v1602_v19 }
 0x4bf   : > { %1783 = vmatprep.mubr.f32.mxu0 %v2348_v4 }
 0x541   : > { %v1593_v61 = vpop.xlane.xlu0 %1592 }
 0x542   : > { %2280 = vrcp.f32 %v1593_v61 }
 0x545   : > { %v1596_v20 = vpop.xlane.xlu1 %1595 }
 0x546   : > { %2282 = vrcp.f32 %v1596_v20 }
 0x54f   : > { %v2281_v21 = vpop.eup %2280 }
 0x550   : > { %v1603_v2 = vmul.f32 %v2281_v21, %v2273_v11 }
 0x552   : > { %2201 = vmatprep.mubr.msk.f32.mxu1 %vm1216_vm0, %v1603_v2  ;;  %2139 = vmatmul.mubr.msk.f32.gmra.mxu0 %vm1216_vm0, %v1603_v2 }
 0x553   : > { %v2283_v22 = vpop.eup %2282  ;;  %1789 = vmatprep.mubr.f32.mxu0 %v2348_v4 }
 0x554   : > { %v1604_v23 = vmul.f32 %v2283_v22, %v2277_v16 }
 0x556   : > { %2202 = vmatmul.mubr.msk.f32.gmra.mxu1 %vm1216_vm0, %v1604_v23  ;;  %2140 = vmatmul.mubr.msk.f32.gmra.mxu0 %vm1216_vm0, %v1604_v23 }
 0x557   : > { %1889 = vmatprep.mubr.f32.mxu1 %v2348_v4  ;;  %v1459_v4 = vld [vmem:[%s3447_s3 + $0x38] sm:$0xff] }
 0x558   : > { %v1467_v57 = vmul.f32 %v1459_v4, %v3294_v54  ;;  %v1454_v54 = vld [vmem:[%s3447_s3 + $0x10] sm:$0xff] }
 0x559   : > { %v1462_v10 = vmul.f32 %v1454_v54, %v3283_v35  ;;  %v1821_v35 = vld [vmem:[%s3449_s5] sm:$0xff] }
 0x57a   : > { %v1773_v26 = vpop.f32.mrf.mxu0 }
 0x57b   : > { %v1805_v15 = vmul.f32 %v2141_v63, %v1773_v26  ;;  %v2150_v26 = vld [vmem:[%s3451_s7] ss:$0 sm:$0xff] }
 0x57c   : > { %v1775_v27 = vpop.f32.mrf.mxu0 }
 0x57d   : > { %v1806_v7 = vmul.f32 %v2142_v46, %v1775_v27  ;;  %v1813_v48 = vadd.f32 %v1805_v15, %v1460_v13 }
 0x57e   : > { %v2200_v24 = vpop.f32.mrf.mxu1  ;;  %v1779_v28 = vpop.f32.mrf.mxu0 }
 0x57f   : > { %2134 = vst.msk [vmem:[%s3268_s12 + $0x28] sm:$0xff] %vm1358_vm1, %v2200_v24  ;;  %v1807_v3 = vmul.f32 %v2143_v58, %v1779_v28  ;;  %v1814_v16 = vadd.f32 %v1806_v7, %v1461_v50  ;;  %v2151_v28 = vld [vmem:[%s3452_s8] ss:$0 sm:$0xff] }
 0x580   : > { %v1683_v25 = vpop.f32.mrf.mxu1  ;;  %v1781_v30 = vpop.f32.mrf.mxu0 }
 0x581   : > { %2133 = vst.msk [vmem:[%s3268_s12 + $0x20] sm:$0xff] %vm1358_vm1, %v1683_v25  ;;  %v1808_v0 = vmul.f32 %v2144_v40, %v1781_v30  ;;  %v1815_v14 = vadd.f32 %v1807_v3, %v1462_v10 }
 0x583   : > { %v1816_v12 = vadd.f32 %v1808_v0, %v1463_v52 }
 0x612   : > { %v1785_v32 = vpop.f32.mrf.mxu0 }
 0x613   : > { %v1809_v60 = vmul.f32 %v2145_v44, %v1785_v32 }
 0x614   : > { %v1787_v36 = vpop.f32.mrf.mxu0 }
 0x615   : > { %v1810_v59 = vmul.f32 %v2146_v29, %v1787_v36  ;;  %v1817_v11 = vadd.f32 %v1809_v60, %v1464_v9 }
 0x616   : > { %v2203_v31 = vpop.f32.mrf.mxu1  ;;  %v1791_v34 = vpop.f32.mrf.mxu0 }
 0x617   : > { %2136 = vst.msk [vmem:[%s3268_s12 + $0x38] sm:$0xff] %vm1358_vm1, %v2203_v31  ;;  %v1811_v47 = vmul.f32 %v2147_v41, %v1791_v34  ;;  %v1818_v8 = vadd.f32 %v1810_v59, %v1465_v62 }
 0x618   : > { %v1693_v51 = vpop.f32.mrf.mxu1  ;;  %v1793_v55 = vpop.f32.mrf.mxu0 }
 0x619   : > { %2135 = vst.msk [vmem:[%s3268_s12 + $0x30] sm:$0xff] %vm1358_vm1, %v1693_v51  ;;  %v1812_v42 = vmul.f32 %v2148_v37, %v1793_v55  ;;  %v1819_v5 = vadd.f32 %v1811_v47, %v1466_v45 }
 0x61b   : > { %v1820_v1 = vadd.f32 %v1812_v42, %v1467_v57 }
 0x61d   : > { %1849 = vmatprep.subr.mxu1 %v1820_v1 }
 0x61e   : > { %1850 = vmatpush1.msra.mxu1 %v1819_v5 }
 0x61f   : > { %1851 = vmatprep.subr.mxu1 %v1818_v8 }
 0x620   : > { %1852 = vmatpush1.msra.mxu1 %v1817_v11 }
 0x621   : > { %1853 = vmatprep.subr.mxu1 %v1816_v12 }
 0x622   : > { %1854 = vmatpush1.msra.mxu1 %v1815_v14 }
 0x623   : > { %1855 = vmatprep.subr.mxu1 %v1814_v16 }
 0x624   : > { %1856 = vmatpush1.msra.mxu1 %v1813_v48 }
 0x625   : > { %2149 = vmatmul.mubr.msk.f32.vlgmr.msra.gmra.mxu1 %vm1216_vm0, %v1821_v35 }
 0x6e5   : > { %v1891_v39 = vpop.f32.mrf.mxu1 }
 0x6e7   : > { %v1893_v49 = vpop.f32.mrf.mxu1 }
 0x6e8   : > { %v1896_v18 = vadd.f32 %v1893_v49, %v1891_v39 }
 0x6ea   : > { %v1898_v19 = vadd.f32 %v1897_v17, %v1896_v18 }
 0x6ec   : > { %1899 = vadd.xlane.f32.xlu0 %v1898_v19 }
 0x775   : > { %v1900_v61 = vpop.xlane.xlu0 %1899 }
 0x776   : > { %v1902_v20 = vmul.f32 0.0078125, %v1900_v61 }
 0x778   : > { %v1903_v21 = vsub.f32 %v1898_v19, %v1902_v20 }
 0x77a   : > { %v1904_v2 = vmul.f32 %v1903_v21, %v1903_v21 }
 0x77c   : > { %1905 = vadd.xlane.f32.xlu1 %v1904_v2 }
 0x805   : > { %v1906_v22 = vpop.xlane.xlu1 %1905 }
 0x806   : > { %v1907_v23 = vmul.f32 0.0078125, %v1906_v22 }
 0x808   : > { %v1908_v24 = vadd.f32 1e-05, %v1907_v23 }
 0x80a   : > { %2284 = vrsqrt.f32 %v1908_v24 }
 0x817   : > { %v2285_v25 = vpop.eup %2284 }
 0x818   : > { %v1910_v27 = vmul.f32 %v2285_v25, %v1903_v21 }
 0x81a   : > { %v1918_v30 = vmul.f32 %v2150_v26, %v1910_v27 }
 0x81c   : > { %v1926_v32 = vadd.f32 %v2151_v28, %v1918_v30 }
 0x81e   : > { %1927 = vst [vmem:[%s367_s25] sm:$0xff] %v1926_v32 }
 0x81f   : > { %2299 = shalt.err (!%p2296_p4)
}
 0x820   : > { %s2300_s27 = scalar_lea.hbm %s1944_s0, 128  ;;  %s2304_s28 = scalar_lea.hbm %s3453_s9, 256 }
 0x821   : > { %p2301_p7 = scmp.ne.s32.totalorder %s1944_s0, %s2300_s27  ;;  %p2305_p10 = scmp.lt.s32.totalorder %s1944_s0, %s3453_s9 }
 0x822   : > { %p2306_p11 = scmp.lt.s32.totalorder %s2304_s28, %s2300_s27 }
 0x823   : > { %p2302_p8 = pnand %p2301_p7, %p2443_p5 }
 0x824   : > { %p2307_p12 = por %p2306_p11, %p2305_p10 }
 0x825   : > { %p2303_p9 = pneg %p2302_p8 }
 0x827   : > { %p2308_p13 = pnand %p2307_p12, %p2303_p9 }
 0x829   : > { %2311 = shalt.err (!%p2308_p13)
}
 0x82a   : > { %2212 = dma.vmem_to_hbm [thread:$0]  (%p2443_p5), %s1947_s29, 128, %s1944_s0, %s1929_s1   ;;  %v1998_v36 = vld [vmem:[%s3268_s12] sm:$0xff] (%p2443_p5)  ;;  %v2000_v41 = vld [vmem:[%s3268_s12 + $0x8] sm:$0xff] (%p2443_p5)  ;;  %v2002_v4 = vld [vmem:[%s3268_s12 + $0x10] sm:$0xff] (%p2443_p5) }
 0x82b   : > { %1952 = sbr.rel (!%p2443_p5) target bundleno = 2097 (0x831), region = 64  ;;  %s2159_s2 = sshll.u32 (%p2443_p5), %s2426_s17, 5  ;;  %v2004_v29 = vld [vmem:[%s3268_s12 + $0x18] sm:$0xff] (%p2443_p5)  ;;  %v2006_v31 = vld [vmem:[%s3268_s12 + $0x20] sm:$0xff] (%p2443_p5)  ;;  %v2008_v34 = vld [vmem:[%s3268_s12 + $0x28] sm:$0xff] (%p2443_p5) }
 0x82c   : > { %s1955_s0 = scalar_lea.vmem (%p2443_p5), %s3454_s10, %s2159_s2  ;;  %v2010_v37 = vld [vmem:[%s3268_s12 + $0x30] sm:$0xff] (%p2443_p5)  ;;  %v2012_v33 = vld [vmem:[%s3268_s12 + $0x38] sm:$0xff] (%p2443_p5) }
 0x82d   : > { %1999 = vst [vmem:[%s1955_s0] sm:$0xff] (%p2443_p5), %v1998_v36  ;;  %2001 = vst [vmem:[%s1955_s0 + $0x8] sm:$0xff] (%p2443_p5), %v2000_v41 }
 0x82e   : > { %2003 = vst [vmem:[%s1955_s0 + $0x10] sm:$0xff] (%p2443_p5), %v2002_v4  ;;  %2005 = vst [vmem:[%s1955_s0 + $0x18] sm:$0xff] (%p2443_p5), %v2004_v29 }
 0x82f   : > { %2007 = vst [vmem:[%s1955_s0 + $0x40] sm:$0xff] (%p2443_p5), %v2006_v31  ;;  %2009 = vst [vmem:[%s1955_s0 + $0x48] sm:$0xff] (%p2443_p5), %v2008_v34 }
 0x830   : > { %2011 = vst [vmem:[%s1955_s0 + $0x50] sm:$0xff] %v2010_v37  ;;  %2013 = vst [vmem:[%s1955_s0 + $0x58] sm:$0xff] %v2012_v33 }
 0x831 PF: > { %p2218_p5 = scmp.ge.s32.totalorder %s2346_s16, 2  ;;  %s2025_s1 = sand.u32 1, %s2334_s13  }
 0x832   : > { %s2026_s17 = scalar_lea.sflag [#allocation3], %s2025_s1 }
 0x833   : > { %p2215_p0 = pnand %p2218_p5, %p2447_p6 }
 0x835   : > { %p2216_p1 = pneg %p2215_p0 }
 0x837   : > { %2329 = dma.done.wait (%p2216_p1), %s2026_s17, 128  }
 0x838   : > { %2331 = vsyncadd (%p2216_p1), %s2026_s17, 4294967168  ;;  %s3464_s23 = sld [smem:[#allocation6_spill]]  ;;  %p21_p2 = scmp.ge.s32.totalorder %s2430_s19, 4  }
 0x839   : > { %s3465_s13 = smov %s2338_s14  ;;  %s3466_s14 = smov %s2342_s15 }
 0x83a   : > { %s3468_s16 = smov %s2430_s19  ;;  %23 = sbr.rel (!%p21_p2) target bundleno = 7 (0x7), region = 146 }
 0x83e   : > { %s3467_s15 = smov %s3464_s23 }
 0x83f   :  { %2038 = vsyncpa [#allocation3], 1 }
 0x840   :  { %2040 = vsyncpa [#allocation3 + $0x1], 1 }

</bundles_post_ra>
